<compile_context>
chip_gen: v7x
topology: tpu7x:2x2x1
jax: 0.10.0
libtpu: 0.0.40
codegen_flags: <defaults>
</compile_context>

<pallas_src>
import functools

import jax
import jax.numpy as jnp
from jax import lax
from jax.experimental import pallas as pl
from jax.experimental.pallas import tpu as pltpu


# ---------------------------------------------------------------------------
# Kernel
# ---------------------------------------------------------------------------
def _attention_network_kernel(xf_ref, lstm_ref, fc1w_ref, fc2w_ref, fc3w_ref,
                              fc4w_ref, fcb_ref, out_ref,
                              *, S, Bp, H, E, D1, D2, D3, D4):
    H2 = 2 * H

    # ---- packed LSTM parameters (static row offsets, zero-cost slices) ----------
    w_ih2 = lstm_ref[0:2 * E, :]                       # (2E, 8H) fused input->gates
    w_hh2 = lstm_ref[2 * E:2 * E + H2, :]              # (2H, 8H) block-diag hidden->gates
    bias = lstm_ref[2 * E + H2:2 * E + H2 + 1, :]      # (1, 8H)

    # ---- hoisted input projections: all timesteps, both directions --------------
    # xf_ref row t*Bp+b = [x_t[b] , x_{S-1-t}[b]]  ->  gx row is already the fused
    # per-step gate input for both directions (no select needed in the loop).
    gx = (jnp.dot(xf_ref[...], w_ih2, preferred_element_type=jnp.float32)
          + bias)                                       # (S*Bp, 8H)

    h_cat = jnp.zeros((Bp, H2), jnp.float32)            # [h_fwd | h_bwd]
    c_cat = jnp.zeros((Bp, H2), jnp.float32)
    enc_f = [None] * S
    enc_b = [None] * S

    # ---- fused bidirectional recurrence, fully unrolled (S steps) ---------------
    # Gate column groups: [f_f,f_b | i_f,i_b | o_f,o_b | g_f,g_b]
    for t in range(S):
        gates = gx[t * Bp:(t + 1) * Bp, :] + jnp.dot(
            h_cat, w_hh2, preferred_element_type=jnp.float32)       # (Bp, 8H)

        sig = jax.nn.sigmoid(gates[:, :3 * H2])          # [f | i | o]
        f_g = sig[:, 0:H2]
        i_g = sig[:, H2:2 * H2]
        o_g = sig[:, 2 * H2:3 * H2]
        g_g = jnp.tanh(gates[:, 3 * H2:])                # [g_f | g_b]

        c_cat = f_g * c_cat + i_g * g_g
        h_cat = o_g * jnp.tanh(c_cat)

        enc_f[t] = h_cat[:, :H]                          # fwd hidden at time t
        enc_b[S - 1 - t] = h_cat[:, H:]                  # bwd hidden at time S-1-t

    # final hidden = encoder_hidden[-2] + encoder_hidden[-1]
    hidden = h_cat[:, :H] + h_cat[:, H:]                 # (Bp, H)

    # ---- attention: batched score reduce, softmax over seq, weighted sum --------
    enc3 = jnp.stack([enc_f[t] + enc_b[t] for t in range(S)], axis=0)   # (S, Bp, H)
    scores = jnp.sum(enc3 * hidden[None, :, :], axis=-1, keepdims=True)  # (S, Bp, 1)
    m = jnp.max(scores, axis=0, keepdims=True)                           # (1, Bp, 1)
    e = jnp.exp(scores - m)
    denom = jnp.sum(e, axis=0, keepdims=True)                            # (1, Bp, 1)
    alphas = e * pl.reciprocal(denom, approx=False)                      # exact, EUP
    attn = jnp.sum(enc3 * alphas, axis=0)                                # (Bp, H)

    # ---- MLP head (biases packed in one buffer, static lane slices) -------------
    b1 = fcb_ref[:, 0:D1]
    b2 = fcb_ref[:, D1:D1 + D2]
    b3 = fcb_ref[:, D1 + D2:D1 + D2 + D3]
    b4 = fcb_ref[:, D1 + D2 + D3:D1 + D2 + D3 + D4]

    h1 = jnp.maximum(
        jnp.dot(attn, fc1w_ref[...], preferred_element_type=jnp.float32) + b1, 0.0)
    h2 = jnp.maximum(
        jnp.dot(h1, fc2w_ref[...], preferred_element_type=jnp.float32) + b2, 0.0)
    h3 = jnp.maximum(
        jnp.dot(h2, fc3w_ref[...], preferred_element_type=jnp.float32) + b3, 0.0)
    out_ref[...] = (jnp.dot(h3, fc4w_ref[...], preferred_element_type=jnp.float32)
                    + b4)


# ---------------------------------------------------------------------------
# Wrapper-side weight repacking (one-time XLA work)
# ---------------------------------------------------------------------------
def _pack_gate_cols(fwd4h, bwd4h):
    """PyTorch per-direction gate order [i,f,g,o] -> packed column groups
    [f_f,f_b, i_f,i_b, o_f,o_b, g_f,g_b]."""
    i_f, f_f, g_f, o_f = jnp.split(fwd4h, 4, axis=-1)
    i_b, f_b, g_b, o_b = jnp.split(bwd4h, 4, axis=-1)
    return jnp.concatenate([f_f, f_b, i_f, i_b, o_f, o_b, g_f, g_b], axis=-1)


def _block_pack(fwd_mat, bwd_mat):
    """Block matrix (Rf+Rb, 8H): rows 0:Rf feed only the forward-gate columns,
    rows Rf: feed only the backward-gate columns.  Used for both the fused
    input->gate matrix (Rf=Rb=E) and the block-diagonal hidden->gate matrix
    (Rf=Rb=H)."""
    i_f, f_f, g_f, o_f = jnp.split(fwd_mat, 4, axis=-1)
    i_b, f_b, g_b, o_b = jnp.split(bwd_mat, 4, axis=-1)
    Zf = jnp.zeros_like(i_f)
    Zb = jnp.zeros_like(i_b)
    top = jnp.concatenate([f_f, Zf, i_f, Zf, o_f, Zf, g_f, Zf], axis=-1)
    bot = jnp.concatenate([Zb, f_b, Zb, i_b, Zb, o_b, Zb, g_b], axis=-1)
    return jnp.concatenate([top, bot], axis=0)


@jax.jit
def attention_network_forward(x, params):
    S, B, E = x.shape
    H = params["w_hh_f"].shape[0]
    Bp = max(8, ((B + 7) // 8) * 8)               # pad batch to a sublane multiple

    # packed LSTM parameter block: [ W_ih2 (2E,8H) ; W_hh2 (2H,8H) ; bias (1,8H) ]
    w_ih2 = _block_pack(params["w_ih_f"], params["w_ih_b"])          # (2E, 8H)
    w_hh2 = _block_pack(params["w_hh_f"], params["w_hh_b"])          # (2H, 8H)
    b_cat = _pack_gate_cols(params["b_f"], params["b_b"])            # (1, 8H)
    lstm_w = jnp.concatenate([w_ih2, w_hh2, b_cat], axis=0)          # (2E+2H+1, 8H)

    # fused input slab: row t*Bp+b = [x_t[b] , x_{S-1-t}[b]]
    x_pad = jnp.pad(x, ((0, 0), (0, Bp - B), (0, 0)))                # (S, Bp, E)
    xf2 = jnp.concatenate([x_pad.reshape(S * Bp, E),
                           x_pad[::-1].reshape(S * Bp, E)], axis=-1)  # (S*Bp, 2E)

    # packed FC biases
    fcb = jnp.concatenate([params["fc1_b"], params["fc2_b"],
                           params["fc3_b"], params["fc4_b"]], axis=-1)
    D1 = params["fc1_b"].shape[-1]
    D2 = params["fc2_b"].shape[-1]
    D3 = params["fc3_b"].shape[-1]
    D4 = params["fc4_b"].shape[-1]

    args = (xf2, lstm_w, params["fc1_w"], params["fc2_w"],
            params["fc3_w"], params["fc4_w"], fcb)

    kernel = functools.partial(_attention_network_kernel, S=S, Bp=Bp, H=H, E=E,
                               D1=D1, D2=D2, D3=D3, D4=D4)
    out_p = pl.pallas_call(
        kernel,
        out_shape=jax.ShapeDtypeStruct((Bp, 1), jnp.float32),
        in_specs=[pl.BlockSpec(memory_space=pltpu.MemorySpace.VMEM)] * len(args),
        out_specs=pl.BlockSpec(memory_space=pltpu.MemorySpace.VMEM),
    )(*args)
    return out_p[:B]


# ---------------------------------------------------------------------------
# Pure-JAX reference (mirrors the PyTorch forward) for a correctness check
# ---------------------------------------------------------------------------
def _lstm_cell_ref(x_t, h, c, w_ih, w_hh, b, H):
    gates = x_t @ w_ih + h @ w_hh + b           # PyTorch gate order: i, f, g, o
    i = jax.nn.sigmoid(gates[:, 0 * H:1 * H])
    f = jax.nn.sigmoid(gates[:, 1 * H:2 * H])
    g = jnp.tanh(gates[:, 2 * H:3 * H])
    o = jax.nn.sigmoid(gates[:, 3 * H:4 * H])
    c_new = f * c + i * g
    h_new = o * jnp.tanh(c_new)
    return h_new, c_new


def reference_forward(x, params):
    S, B, _E = x.shape
    H = params["w_hh_f"].shape[0]

    def run_dir(xs, w_ih, w_hh, b):
        def step(carry, x_t):
            h, c = carry
            h, c = _lstm_cell_ref(x_t, h, c, w_ih, w_hh, b, H)
            return (h, c), h
        (h_T, _), hs = lax.scan(step, (jnp.zeros((B, H)), jnp.zeros((B, H))), xs)
        return hs, h_T

    hs_f, hf = run_dir(x, params["w_ih_f"], params["w_hh_f"], params["b_f"])
    hs_b_rev, hb = run_dir(x[::-1], params["w_ih_b"], params["w_hh_b"], params["b_b"])
    hs_b = hs_b_rev[::-1]

    enc = jnp.transpose(hs_f + hs_b, (1, 0, 2))          # (B, S, H)
    hidden = hf + hb                                     # (B, H)
    scores = jnp.einsum("bsh,bh->bs", enc, hidden)
    alphas = jax.nn.softmax(scores, axis=1)
    attn = jnp.einsum("bsh,bs->bh", enc, alphas)

    h1 = jax.nn.relu(attn @ params["fc1_w"] + params["fc1_b"])
    h2 = jax.nn.relu(h1 @ params["fc2_w"] + params["fc2_b"])
    h3 = jax.nn.relu(h2 @ params["fc3_w"] + params["fc3_b"])
    return h3 @ params["fc4_w"] + params["fc4_b"]


# ---------------------------------------------------------------------------
# Deterministic parameter init (shapes follow nn.LSTM / nn.Linear of the module)
# ---------------------------------------------------------------------------
def init_params(key, emb, hidden):
    ks = jax.random.split(key, 16)
    s = 1.0 / jnp.sqrt(hidden)

    def u(k, shape, scale):
        return jax.random.uniform(k, shape, jnp.float32, -scale, scale)

    return {
        # LSTM weights stored transposed: (in, 4H) / (H, 4H); biases = b_ih + b_hh.
        "w_ih_f": u(ks[0], (emb, 4 * hidden), s),
        "w_hh_f": u(ks[1], (hidden, 4 * hidden), s),
        "b_f":    u(ks[2], (1, 4 * hidden), s) + u(ks[3], (1, 4 * hidden), s),
        "w_ih_b": u(ks[4], (emb, 4 * hidden), s),
        "w_hh_b": u(ks[5], (hidden, 4 * hidden), s),
        "b_b":    u(ks[6], (1, 4 * hidden), s) + u(ks[7], (1, 4 * hidden), s),
        "fc1_w": u(ks[8],  (hidden, 512), 1.0 / jnp.sqrt(hidden)),
        "fc1_b": u(ks[9],  (1, 512),      1.0 / jnp.sqrt(hidden)),
        "fc2_w": u(ks[10], (512, 128),    1.0 / jnp.sqrt(512.0)),
        "fc2_b": u(ks[11], (1, 128),      1.0 / jnp.sqrt(512.0)),
        "fc3_w": u(ks[12], (128, 32),     1.0 / jnp.sqrt(128.0)),
        "fc3_b": u(ks[13], (1, 32),       1.0 / jnp.sqrt(128.0)),
        "fc4_w": u(ks[14], (32, 1),       1.0 / jnp.sqrt(32.0)),
        "fc4_b": u(ks[15], (1, 1),        1.0 / jnp.sqrt(32.0)),
    }


if __name__ == "__main__":
    SEQ, BATCH, EMB, HIDDEN = 8, 2, 16, 32   # AttentionNetwork(embedding_size=16, hidden_units=32)

    key = jax.random.PRNGKey(0)
    kx, kp = jax.random.split(key)
    x = jax.random.normal(kx, (SEQ, BATCH, EMB), jnp.float32)
    params = init_params(kp, EMB, HIDDEN)

    out = jax.block_until_ready(attention_network_forward(x, params))
    ref = jax.block_until_ready(reference_forward(x, params))

    assert out.shape == (BATCH, 1), out.shape
    assert jnp.allclose(out, ref, atol=2e-3, rtol=2e-3), (out, ref)

    print("KERNEL_OK")
</pallas_src>

<mosaic_0001>
module attributes {stable_mosaic.version = 11 : i64} {
  func.func @_attention_network_kernel(%arg0: memref<64x32xf32, #tpu.memory_space<vmem>>, %arg1: memref<97x256xf32, #tpu.memory_space<vmem>>, %arg2: memref<32x512xf32, #tpu.memory_space<vmem>>, %arg3: memref<512x128xf32, #tpu.memory_space<vmem>>, %arg4: memref<128x32xf32, #tpu.memory_space<vmem>>, %arg5: memref<32x1xf32, #tpu.memory_space<vmem>>, %arg6: memref<1x673xf32, #tpu.memory_space<vmem>>, %arg7: memref<8x1xf32, #tpu.memory_space<vmem>>) attributes {dimension_semantics = [], scalar_prefetch = 0 : i64, scratch_operands = 0 : i64, tpu.core_type = #tpu.core_type<tc>} {
    %c0 = arith.constant 0 : index
    %c0_0 = arith.constant 0 : index
    %0 = vector.load %arg1[%c0, %c0_0] : memref<97x256xf32, #tpu.memory_space<vmem>>, vector<32x256xf32>
    %c32 = arith.constant 32 : index
    %c0_1 = arith.constant 0 : index
    %1 = vector.load %arg1[%c32, %c0_1] : memref<97x256xf32, #tpu.memory_space<vmem>>, vector<64x256xf32>
    %c96 = arith.constant 96 : index
    %c0_2 = arith.constant 0 : index
    %2 = vector.load %arg1[%c96, %c0_2] : memref<97x256xf32, #tpu.memory_space<vmem>>, vector<1x256xf32>
    %c0_3 = arith.constant 0 : index
    %c0_4 = arith.constant 0 : index
    %3 = vector.load %arg0[%c0_3, %c0_4] : memref<64x32xf32, #tpu.memory_space<vmem>>, vector<64x32xf32>
    %cst = arith.constant dense<0.000000e+00> : vector<64x256xf32>
    %4 = tpu.matmul %3, %0, %cst {dimension_numbers = #tpu.dot_dimension_numbers<[1], [0], [0], [1], [0, 0, 1, 1], [], []>} : vector<64x32xf32>, vector<32x256xf32>, vector<64x256xf32> -> vector<64x256xf32>
    %5 = vector.broadcast %2 : vector<1x256xf32> to vector<64x256xf32>
    %6 = arith.addf %4, %5 : vector<64x256xf32>
    %cst_5 = arith.constant 0.000000e+00 : f32
    %7 = vector.broadcast %cst_5 : f32 to vector<8x64xf32>
    %cst_6 = arith.constant 0.000000e+00 : f32
    %8 = vector.broadcast %cst_6 : f32 to vector<8x64xf32>
    %9 = vector.extract_strided_slice %6 {offsets = [0, 0], sizes = [8, 256], strides = [1, 1]} : vector<64x256xf32> to vector<8x256xf32>
    %cst_7 = arith.constant dense<0.000000e+00> : vector<8x256xf32>
    %10 = tpu.matmul %7, %1, %cst_7 {dimension_numbers = #tpu.dot_dimension_numbers<[1], [0], [0], [1], [0, 0, 1, 1], [], []>} : vector<8x64xf32>, vector<64x256xf32>, vector<8x256xf32> -> vector<8x256xf32>
    %11 = arith.addf %9, %10 : vector<8x256xf32>
    %12 = vector.extract_strided_slice %11 {offsets = [0, 0], sizes = [8, 192], strides = [1, 1]} : vector<8x256xf32> to vector<8x192xf32>
    %13 = arith.negf %12 : vector<8x192xf32>
    %14 = math.exp %13 : vector<8x192xf32>
    %cst_8 = arith.constant 1.000000e+00 : f32
    %15 = vector.broadcast %cst_8 : f32 to vector<8x192xf32>
    %16 = arith.addf %15, %14 : vector<8x192xf32>
    %17 = arith.divf %15, %16 : vector<8x192xf32>
    %18 = vector.extract_strided_slice %17 {offsets = [0, 0], sizes = [8, 64], strides = [1, 1]} : vector<8x192xf32> to vector<8x64xf32>
    %19 = vector.extract_strided_slice %17 {offsets = [0, 64], sizes = [8, 64], strides = [1, 1]} : vector<8x192xf32> to vector<8x64xf32>
    %20 = vector.extract_strided_slice %17 {offsets = [0, 128], sizes = [8, 64], strides = [1, 1]} : vector<8x192xf32> to vector<8x64xf32>
    %21 = vector.extract_strided_slice %11 {offsets = [0, 192], sizes = [8, 64], strides = [1, 1]} : vector<8x256xf32> to vector<8x64xf32>
    %22 = math.tanh %21 : vector<8x64xf32>
    %23 = arith.mulf %18, %8 : vector<8x64xf32>
    %24 = arith.mulf %19, %22 : vector<8x64xf32>
    %25 = arith.addf %23, %24 : vector<8x64xf32>
    %26 = math.tanh %25 : vector<8x64xf32>
    %27 = arith.mulf %20, %26 : vector<8x64xf32>
    %28 = vector.extract_strided_slice %27 {offsets = [0, 0], sizes = [8, 32], strides = [1, 1]} : vector<8x64xf32> to vector<8x32xf32>
    %29 = vector.extract_strided_slice %27 {offsets = [0, 32], sizes = [8, 32], strides = [1, 1]} : vector<8x64xf32> to vector<8x32xf32>
    %30 = vector.extract_strided_slice %6 {offsets = [8, 0], sizes = [8, 256], strides = [1, 1]} : vector<64x256xf32> to vector<8x256xf32>
    %cst_9 = arith.constant dense<0.000000e+00> : vector<8x256xf32>
    %31 = tpu.matmul %27, %1, %cst_9 {dimension_numbers = #tpu.dot_dimension_numbers<[1], [0], [0], [1], [0, 0, 1, 1], [], []>} : vector<8x64xf32>, vector<64x256xf32>, vector<8x256xf32> -> vector<8x256xf32>
    %32 = arith.addf %30, %31 : vector<8x256xf32>
    %33 = vector.extract_strided_slice %32 {offsets = [0, 0], sizes = [8, 192], strides = [1, 1]} : vector<8x256xf32> to vector<8x192xf32>
    %34 = arith.negf %33 : vector<8x192xf32>
    %35 = math.exp %34 : vector<8x192xf32>
    %cst_10 = arith.constant 1.000000e+00 : f32
    %36 = vector.broadcast %cst_10 : f32 to vector<8x192xf32>
    %37 = arith.addf %36, %35 : vector<8x192xf32>
    %38 = arith.divf %36, %37 : vector<8x192xf32>
    %39 = vector.extract_strided_slice %38 {offsets = [0, 0], sizes = [8, 64], strides = [1, 1]} : vector<8x192xf32> to vector<8x64xf32>
    %40 = vector.extract_strided_slice %38 {offsets = [0, 64], sizes = [8, 64], strides = [1, 1]} : vector<8x192xf32> to vector<8x64xf32>
    %41 = vector.extract_strided_slice %38 {offsets = [0, 128], sizes = [8, 64], strides = [1, 1]} : vector<8x192xf32> to vector<8x64xf32>
    %42 = vector.extract_strided_slice %32 {offsets = [0, 192], sizes = [8, 64], strides = [1, 1]} : vector<8x256xf32> to vector<8x64xf32>
    %43 = math.tanh %42 : vector<8x64xf32>
    %44 = arith.mulf %39, %25 : vector<8x64xf32>
    %45 = arith.mulf %40, %43 : vector<8x64xf32>
    %46 = arith.addf %44, %45 : vector<8x64xf32>
    %47 = math.tanh %46 : vector<8x64xf32>
    %48 = arith.mulf %41, %47 : vector<8x64xf32>
    %49 = vector.extract_strided_slice %48 {offsets = [0, 0], sizes = [8, 32], strides = [1, 1]} : vector<8x64xf32> to vector<8x32xf32>
    %50 = vector.extract_strided_slice %48 {offsets = [0, 32], sizes = [8, 32], strides = [1, 1]} : vector<8x64xf32> to vector<8x32xf32>
    %51 = vector.extract_strided_slice %6 {offsets = [16, 0], sizes = [8, 256], strides = [1, 1]} : vector<64x256xf32> to vector<8x256xf32>
    %cst_11 = arith.constant dense<0.000000e+00> : vector<8x256xf32>
    %52 = tpu.matmul %48, %1, %cst_11 {dimension_numbers = #tpu.dot_dimension_numbers<[1], [0], [0], [1], [0, 0, 1, 1], [], []>} : vector<8x64xf32>, vector<64x256xf32>, vector<8x256xf32> -> vector<8x256xf32>
    %53 = arith.addf %51, %52 : vector<8x256xf32>
    %54 = vector.extract_strided_slice %53 {offsets = [0, 0], sizes = [8, 192], strides = [1, 1]} : vector<8x256xf32> to vector<8x192xf32>
    %55 = arith.negf %54 : vector<8x192xf32>
    %56 = math.exp %55 : vector<8x192xf32>
    %cst_12 = arith.constant 1.000000e+00 : f32
    %57 = vector.broadcast %cst_12 : f32 to vector<8x192xf32>
    %58 = arith.addf %57, %56 : vector<8x192xf32>
    %59 = arith.divf %57, %58 : vector<8x192xf32>
    %60 = vector.extract_strided_slice %59 {offsets = [0, 0], sizes = [8, 64], strides = [1, 1]} : vector<8x192xf32> to vector<8x64xf32>
    %61 = vector.extract_strided_slice %59 {offsets = [0, 64], sizes = [8, 64], strides = [1, 1]} : vector<8x192xf32> to vector<8x64xf32>
    %62 = vector.extract_strided_slice %59 {offsets = [0, 128], sizes = [8, 64], strides = [1, 1]} : vector<8x192xf32> to vector<8x64xf32>
    %63 = vector.extract_strided_slice %53 {offsets = [0, 192], sizes = [8, 64], strides = [1, 1]} : vector<8x256xf32> to vector<8x64xf32>
    %64 = math.tanh %63 : vector<8x64xf32>
    %65 = arith.mulf %60, %46 : vector<8x64xf32>
    %66 = arith.mulf %61, %64 : vector<8x64xf32>
    %67 = arith.addf %65, %66 : vector<8x64xf32>
    %68 = math.tanh %67 : vector<8x64xf32>
    %69 = arith.mulf %62, %68 : vector<8x64xf32>
    %70 = vector.extract_strided_slice %69 {offsets = [0, 0], sizes = [8, 32], strides = [1, 1]} : vector<8x64xf32> to vector<8x32xf32>
    %71 = vector.extract_strided_slice %69 {offsets = [0, 32], sizes = [8, 32], strides = [1, 1]} : vector<8x64xf32> to vector<8x32xf32>
    %72 = vector.extract_strided_slice %6 {offsets = [24, 0], sizes = [8, 256], strides = [1, 1]} : vector<64x256xf32> to vector<8x256xf32>
    %cst_13 = arith.constant dense<0.000000e+00> : vector<8x256xf32>
    %73 = tpu.matmul %69, %1, %cst_13 {dimension_numbers = #tpu.dot_dimension_numbers<[1], [0], [0], [1], [0, 0, 1, 1], [], []>} : vector<8x64xf32>, vector<64x256xf32>, vector<8x256xf32> -> vector<8x256xf32>
    %74 = arith.addf %72, %73 : vector<8x256xf32>
    %75 = vector.extract_strided_slice %74 {offsets = [0, 0], sizes = [8, 192], strides = [1, 1]} : vector<8x256xf32> to vector<8x192xf32>
    %76 = arith.negf %75 : vector<8x192xf32>
    %77 = math.exp %76 : vector<8x192xf32>
    %cst_14 = arith.constant 1.000000e+00 : f32
    %78 = vector.broadcast %cst_14 : f32 to vector<8x192xf32>
    %79 = arith.addf %78, %77 : vector<8x192xf32>
    %80 = arith.divf %78, %79 : vector<8x192xf32>
    %81 = vector.extract_strided_slice %80 {offsets = [0, 0], sizes = [8, 64], strides = [1, 1]} : vector<8x192xf32> to vector<8x64xf32>
    %82 = vector.extract_strided_slice %80 {offsets = [0, 64], sizes = [8, 64], strides = [1, 1]} : vector<8x192xf32> to vector<8x64xf32>
    %83 = vector.extract_strided_slice %80 {offsets = [0, 128], sizes = [8, 64], strides = [1, 1]} : vector<8x192xf32> to vector<8x64xf32>
    %84 = vector.extract_strided_slice %74 {offsets = [0, 192], sizes = [8, 64], strides = [1, 1]} : vector<8x256xf32> to vector<8x64xf32>
    %85 = math.tanh %84 : vector<8x64xf32>
    %86 = arith.mulf %81, %67 : vector<8x64xf32>
    %87 = arith.mulf %82, %85 : vector<8x64xf32>
    %88 = arith.addf %86, %87 : vector<8x64xf32>
    %89 = math.tanh %88 : vector<8x64xf32>
    %90 = arith.mulf %83, %89 : vector<8x64xf32>
    %91 = vector.extract_strided_slice %90 {offsets = [0, 0], sizes = [8, 32], strides = [1, 1]} : vector<8x64xf32> to vector<8x32xf32>
    %92 = vector.extract_strided_slice %90 {offsets = [0, 32], sizes = [8, 32], strides = [1, 1]} : vector<8x64xf32> to vector<8x32xf32>
    %93 = vector.extract_strided_slice %6 {offsets = [32, 0], sizes = [8, 256], strides = [1, 1]} : vector<64x256xf32> to vector<8x256xf32>
    %cst_15 = arith.constant dense<0.000000e+00> : vector<8x256xf32>
    %94 = tpu.matmul %90, %1, %cst_15 {dimension_numbers = #tpu.dot_dimension_numbers<[1], [0], [0], [1], [0, 0, 1, 1], [], []>} : vector<8x64xf32>, vector<64x256xf32>, vector<8x256xf32> -> vector<8x256xf32>
    %95 = arith.addf %93, %94 : vector<8x256xf32>
    %96 = vector.extract_strided_slice %95 {offsets = [0, 0], sizes = [8, 192], strides = [1, 1]} : vector<8x256xf32> to vector<8x192xf32>
    %97 = arith.negf %96 : vector<8x192xf32>
    %98 = math.exp %97 : vector<8x192xf32>
    %cst_16 = arith.constant 1.000000e+00 : f32
    %99 = vector.broadcast %cst_16 : f32 to vector<8x192xf32>
    %100 = arith.addf %99, %98 : vector<8x192xf32>
    %101 = arith.divf %99, %100 : vector<8x192xf32>
    %102 = vector.extract_strided_slice %101 {offsets = [0, 0], sizes = [8, 64], strides = [1, 1]} : vector<8x192xf32> to vector<8x64xf32>
    %103 = vector.extract_strided_slice %101 {offsets = [0, 64], sizes = [8, 64], strides = [1, 1]} : vector<8x192xf32> to vector<8x64xf32>
    %104 = vector.extract_strided_slice %101 {offsets = [0, 128], sizes = [8, 64], strides = [1, 1]} : vector<8x192xf32> to vector<8x64xf32>
    %105 = vector.extract_strided_slice %95 {offsets = [0, 192], sizes = [8, 64], strides = [1, 1]} : vector<8x256xf32> to vector<8x64xf32>
    %106 = math.tanh %105 : vector<8x64xf32>
    %107 = arith.mulf %102, %88 : vector<8x64xf32>
    %108 = arith.mulf %103, %106 : vector<8x64xf32>
    %109 = arith.addf %107, %108 : vector<8x64xf32>
    %110 = math.tanh %109 : vector<8x64xf32>
    %111 = arith.mulf %104, %110 : vector<8x64xf32>
    %112 = vector.extract_strided_slice %111 {offsets = [0, 0], sizes = [8, 32], strides = [1, 1]} : vector<8x64xf32> to vector<8x32xf32>
    %113 = vector.extract_strided_slice %111 {offsets = [0, 32], sizes = [8, 32], strides = [1, 1]} : vector<8x64xf32> to vector<8x32xf32>
    %114 = vector.extract_strided_slice %6 {offsets = [40, 0], sizes = [8, 256], strides = [1, 1]} : vector<64x256xf32> to vector<8x256xf32>
    %cst_17 = arith.constant dense<0.000000e+00> : vector<8x256xf32>
    %115 = tpu.matmul %111, %1, %cst_17 {dimension_numbers = #tpu.dot_dimension_numbers<[1], [0], [0], [1], [0, 0, 1, 1], [], []>} : vector<8x64xf32>, vector<64x256xf32>, vector<8x256xf32> -> vector<8x256xf32>
    %116 = arith.addf %114, %115 : vector<8x256xf32>
    %117 = vector.extract_strided_slice %116 {offsets = [0, 0], sizes = [8, 192], strides = [1, 1]} : vector<8x256xf32> to vector<8x192xf32>
    %118 = arith.negf %117 : vector<8x192xf32>
    %119 = math.exp %118 : vector<8x192xf32>
    %cst_18 = arith.constant 1.000000e+00 : f32
    %120 = vector.broadcast %cst_18 : f32 to vector<8x192xf32>
    %121 = arith.addf %120, %119 : vector<8x192xf32>
    %122 = arith.divf %120, %121 : vector<8x192xf32>
    %123 = vector.extract_strided_slice %122 {offsets = [0, 0], sizes = [8, 64], strides = [1, 1]} : vector<8x192xf32> to vector<8x64xf32>
    %124 = vector.extract_strided_slice %122 {offsets = [0, 64], sizes = [8, 64], strides = [1, 1]} : vector<8x192xf32> to vector<8x64xf32>
    %125 = vector.extract_strided_slice %122 {offsets = [0, 128], sizes = [8, 64], strides = [1, 1]} : vector<8x192xf32> to vector<8x64xf32>
    %126 = vector.extract_strided_slice %116 {offsets = [0, 192], sizes = [8, 64], strides = [1, 1]} : vector<8x256xf32> to vector<8x64xf32>
    %127 = math.tanh %126 : vector<8x64xf32>
    %128 = arith.mulf %123, %109 : vector<8x64xf32>
    %129 = arith.mulf %124, %127 : vector<8x64xf32>
    %130 = arith.addf %128, %129 : vector<8x64xf32>
    %131 = math.tanh %130 : vector<8x64xf32>
    %132 = arith.mulf %125, %131 : vector<8x64xf32>
    %133 = vector.extract_strided_slice %132 {offsets = [0, 0], sizes = [8, 32], strides = [1, 1]} : vector<8x64xf32> to vector<8x32xf32>
    %134 = vector.extract_strided_slice %132 {offsets = [0, 32], sizes = [8, 32], strides = [1, 1]} : vector<8x64xf32> to vector<8x32xf32>
    %135 = vector.extract_strided_slice %6 {offsets = [48, 0], sizes = [8, 256], strides = [1, 1]} : vector<64x256xf32> to vector<8x256xf32>
    %cst_19 = arith.constant dense<0.000000e+00> : vector<8x256xf32>
    %136 = tpu.matmul %132, %1, %cst_19 {dimension_numbers = #tpu.dot_dimension_numbers<[1], [0], [0], [1], [0, 0, 1, 1], [], []>} : vector<8x64xf32>, vector<64x256xf32>, vector<8x256xf32> -> vector<8x256xf32>
    %137 = arith.addf %135, %136 : vector<8x256xf32>
    %138 = vector.extract_strided_slice %137 {offsets = [0, 0], sizes = [8, 192], strides = [1, 1]} : vector<8x256xf32> to vector<8x192xf32>
    %139 = arith.negf %138 : vector<8x192xf32>
    %140 = math.exp %139 : vector<8x192xf32>
    %cst_20 = arith.constant 1.000000e+00 : f32
    %141 = vector.broadcast %cst_20 : f32 to vector<8x192xf32>
    %142 = arith.addf %141, %140 : vector<8x192xf32>
    %143 = arith.divf %141, %142 : vector<8x192xf32>
    %144 = vector.extract_strided_slice %143 {offsets = [0, 0], sizes = [8, 64], strides = [1, 1]} : vector<8x192xf32> to vector<8x64xf32>
    %145 = vector.extract_strided_slice %143 {offsets = [0, 64], sizes = [8, 64], strides = [1, 1]} : vector<8x192xf32> to vector<8x64xf32>
    %146 = vector.extract_strided_slice %143 {offsets = [0, 128], sizes = [8, 64], strides = [1, 1]} : vector<8x192xf32> to vector<8x64xf32>
    %147 = vector.extract_strided_slice %137 {offsets = [0, 192], sizes = [8, 64], strides = [1, 1]} : vector<8x256xf32> to vector<8x64xf32>
    %148 = math.tanh %147 : vector<8x64xf32>
    %149 = arith.mulf %144, %130 : vector<8x64xf32>
    %150 = arith.mulf %145, %148 : vector<8x64xf32>
    %151 = arith.addf %149, %150 : vector<8x64xf32>
    %152 = math.tanh %151 : vector<8x64xf32>
    %153 = arith.mulf %146, %152 : vector<8x64xf32>
    %154 = vector.extract_strided_slice %153 {offsets = [0, 0], sizes = [8, 32], strides = [1, 1]} : vector<8x64xf32> to vector<8x32xf32>
    %155 = vector.extract_strided_slice %153 {offsets = [0, 32], sizes = [8, 32], strides = [1, 1]} : vector<8x64xf32> to vector<8x32xf32>
    %156 = vector.extract_strided_slice %6 {offsets = [56, 0], sizes = [8, 256], strides = [1, 1]} : vector<64x256xf32> to vector<8x256xf32>
    %cst_21 = arith.constant dense<0.000000e+00> : vector<8x256xf32>
    %157 = tpu.matmul %153, %1, %cst_21 {dimension_numbers = #tpu.dot_dimension_numbers<[1], [0], [0], [1], [0, 0, 1, 1], [], []>} : vector<8x64xf32>, vector<64x256xf32>, vector<8x256xf32> -> vector<8x256xf32>
    %158 = arith.addf %156, %157 : vector<8x256xf32>
    %159 = vector.extract_strided_slice %158 {offsets = [0, 0], sizes = [8, 192], strides = [1, 1]} : vector<8x256xf32> to vector<8x192xf32>
    %160 = arith.negf %159 : vector<8x192xf32>
    %161 = math.exp %160 : vector<8x192xf32>
    %cst_22 = arith.constant 1.000000e+00 : f32
    %162 = vector.broadcast %cst_22 : f32 to vector<8x192xf32>
    %163 = arith.addf %162, %161 : vector<8x192xf32>
    %164 = arith.divf %162, %163 : vector<8x192xf32>
    %165 = vector.extract_strided_slice %164 {offsets = [0, 0], sizes = [8, 64], strides = [1, 1]} : vector<8x192xf32> to vector<8x64xf32>
    %166 = vector.extract_strided_slice %164 {offsets = [0, 64], sizes = [8, 64], strides = [1, 1]} : vector<8x192xf32> to vector<8x64xf32>
    %167 = vector.extract_strided_slice %164 {offsets = [0, 128], sizes = [8, 64], strides = [1, 1]} : vector<8x192xf32> to vector<8x64xf32>
    %168 = vector.extract_strided_slice %158 {offsets = [0, 192], sizes = [8, 64], strides = [1, 1]} : vector<8x256xf32> to vector<8x64xf32>
    %169 = math.tanh %168 : vector<8x64xf32>
    %170 = arith.mulf %165, %151 : vector<8x64xf32>
    %171 = arith.mulf %166, %169 : vector<8x64xf32>
    %172 = arith.addf %170, %171 : vector<8x64xf32>
    %173 = math.tanh %172 : vector<8x64xf32>
    %174 = arith.mulf %167, %173 : vector<8x64xf32>
    %175 = vector.extract_strided_slice %174 {offsets = [0, 0], sizes = [8, 32], strides = [1, 1]} : vector<8x64xf32> to vector<8x32xf32>
    %176 = vector.extract_strided_slice %174 {offsets = [0, 32], sizes = [8, 32], strides = [1, 1]} : vector<8x64xf32> to vector<8x32xf32>
    %177 = vector.extract_strided_slice %174 {offsets = [0, 0], sizes = [8, 32], strides = [1, 1]} : vector<8x64xf32> to vector<8x32xf32>
    %178 = vector.extract_strided_slice %174 {offsets = [0, 32], sizes = [8, 32], strides = [1, 1]} : vector<8x64xf32> to vector<8x32xf32>
    %179 = arith.addf %177, %178 : vector<8x32xf32>
    %180 = arith.addf %28, %176 : vector<8x32xf32>
    %181 = arith.addf %49, %155 : vector<8x32xf32>
    %182 = arith.addf %70, %134 : vector<8x32xf32>
    %183 = arith.addf %91, %113 : vector<8x32xf32>
    %184 = arith.addf %112, %92 : vector<8x32xf32>
    %185 = arith.addf %133, %71 : vector<8x32xf32>
    %186 = arith.addf %154, %50 : vector<8x32xf32>
    %187 = arith.addf %175, %29 : vector<8x32xf32>
    %188 = vector.shape_cast %180 : vector<8x32xf32> to vector<1x8x32xf32>
    %189 = vector.shape_cast %181 : vector<8x32xf32> to vector<1x8x32xf32>
    %190 = vector.shape_cast %182 : vector<8x32xf32> to vector<1x8x32xf32>
    %191 = vector.shape_cast %183 : vector<8x32xf32> to vector<1x8x32xf32>
    %192 = vector.shape_cast %184 : vector<8x32xf32> to vector<1x8x32xf32>
    %193 = vector.shape_cast %185 : vector<8x32xf32> to vector<1x8x32xf32>
    %194 = vector.shape_cast %186 : vector<8x32xf32> to vector<1x8x32xf32>
    %195 = vector.shape_cast %187 : vector<8x32xf32> to vector<1x8x32xf32>
    %196 = tpu.concatenate %188, %189, %190, %191, %192, %193, %194, %195 in 0 : vector<1x8x32xf32>, vector<1x8x32xf32>, vector<1x8x32xf32>, vector<1x8x32xf32>, vector<1x8x32xf32>, vector<1x8x32xf32>, vector<1x8x32xf32>, vector<1x8x32xf32> -> vector<8x8x32xf32>
    %197 = vector.shape_cast %179 : vector<8x32xf32> to vector<1x8x32xf32>
    %198 = vector.broadcast %197 : vector<1x8x32xf32> to vector<8x8x32xf32>
    %199 = arith.mulf %196, %198 : vector<8x8x32xf32>
    %cst_23 = arith.constant dense<0.000000e+00> : vector<8x8xf32>
    %200 = vector.multi_reduction <add>, %199, %cst_23 [2] : vector<8x8x32xf32> to vector<8x8xf32>
    %201 = vector.shape_cast %200 : vector<8x8xf32> to vector<8x8x1xf32>
    %cst_24 = arith.constant dense<0xFF800000> : vector<8x1xf32>
    %202 = vector.multi_reduction <maximumf>, %201, %cst_24 [0] : vector<8x8x1xf32> to vector<8x1xf32>
    %203 = vector.shape_cast %202 : vector<8x1xf32> to vector<1x8x1xf32>
    %204 = vector.broadcast %203 : vector<1x8x1xf32> to vector<8x8x1xf32>
    %205 = arith.subf %201, %204 : vector<8x8x1xf32>
    %206 = math.exp %205 : vector<8x8x1xf32>
    %cst_25 = arith.constant dense<0.000000e+00> : vector<8x1xf32>
    %207 = vector.multi_reduction <add>, %206, %cst_25 [0] : vector<8x8x1xf32> to vector<8x1xf32>
    %208 = vector.shape_cast %207 : vector<8x1xf32> to vector<1x8x1xf32>
    %209 = tpu.reciprocal %208 : vector<1x8x1xf32> -> vector<1x8x1xf32>
    %210 = vector.broadcast %209 : vector<1x8x1xf32> to vector<8x8x1xf32>
    %211 = arith.mulf %206, %210 : vector<8x8x1xf32>
    %212 = vector.broadcast %211 : vector<8x8x1xf32> to vector<8x8x32xf32>
    %213 = arith.mulf %196, %212 : vector<8x8x32xf32>
    %cst_26 = arith.constant dense<0.000000e+00> : vector<8x32xf32>
    %214 = vector.multi_reduction <add>, %213, %cst_26 [0] : vector<8x8x32xf32> to vector<8x32xf32>
    %c0_27 = arith.constant 0 : index
    %c0_28 = arith.constant 0 : index
    %215 = vector.load %arg6[%c0_27, %c0_28] : memref<1x673xf32, #tpu.memory_space<vmem>>, vector<1x512xf32>
    %c0_29 = arith.constant 0 : index
    %c512 = arith.constant 512 : index
    %216 = vector.load %arg6[%c0_29, %c512] : memref<1x673xf32, #tpu.memory_space<vmem>>, vector<1x128xf32>
    %c0_30 = arith.constant 0 : index
    %c640 = arith.constant 640 : index
    %217 = vector.load %arg6[%c0_30, %c640] : memref<1x673xf32, #tpu.memory_space<vmem>>, vector<1x32xf32>
    %c0_31 = arith.constant 0 : index
    %c672 = arith.constant 672 : index
    %218 = vector.load %arg6[%c0_31, %c672] : memref<1x673xf32, #tpu.memory_space<vmem>>, vector<1x1xf32>
    %c0_32 = arith.constant 0 : index
    %c0_33 = arith.constant 0 : index
    %219 = vector.load %arg2[%c0_32, %c0_33] : memref<32x512xf32, #tpu.memory_space<vmem>>, vector<32x512xf32>
    %cst_34 = arith.constant dense<0.000000e+00> : vector<8x512xf32>
    %220 = tpu.matmul %214, %219, %cst_34 {dimension_numbers = #tpu.dot_dimension_numbers<[1], [0], [0], [1], [0, 0, 1, 1], [], []>} : vector<8x32xf32>, vector<32x512xf32>, vector<8x512xf32> -> vector<8x512xf32>
    %221 = vector.broadcast %215 : vector<1x512xf32> to vector<8x512xf32>
    %222 = arith.addf %220, %221 : vector<8x512xf32>
    %cst_35 = arith.constant 0.000000e+00 : f32
    %223 = vector.broadcast %cst_35 : f32 to vector<8x512xf32>
    %224 = arith.maximumf %222, %223 : vector<8x512xf32>
    %c0_36 = arith.constant 0 : index
    %c0_37 = arith.constant 0 : index
    %225 = vector.load %arg3[%c0_36, %c0_37] : memref<512x128xf32, #tpu.memory_space<vmem>>, vector<512x128xf32>
    %cst_38 = arith.constant dense<0.000000e+00> : vector<8x128xf32>
    %226 = tpu.matmul %224, %225, %cst_38 {dimension_numbers = #tpu.dot_dimension_numbers<[1], [0], [0], [1], [0, 0, 1, 1], [], []>} : vector<8x512xf32>, vector<512x128xf32>, vector<8x128xf32> -> vector<8x128xf32>
    %227 = vector.broadcast %216 : vector<1x128xf32> to vector<8x128xf32>
    %228 = arith.addf %226, %227 : vector<8x128xf32>
    %cst_39 = arith.constant 0.000000e+00 : f32
    %229 = vector.broadcast %cst_39 : f32 to vector<8x128xf32>
    %230 = arith.maximumf %228, %229 : vector<8x128xf32>
    %c0_40 = arith.constant 0 : index
    %c0_41 = arith.constant 0 : index
    %231 = vector.load %arg4[%c0_40, %c0_41] : memref<128x32xf32, #tpu.memory_space<vmem>>, vector<128x32xf32>
    %cst_42 = arith.constant dense<0.000000e+00> : vector<8x32xf32>
    %232 = tpu.matmul %230, %231, %cst_42 {dimension_numbers = #tpu.dot_dimension_numbers<[1], [0], [0], [1], [0, 0, 1, 1], [], []>} : vector<8x128xf32>, vector<128x32xf32>, vector<8x32xf32> -> vector<8x32xf32>
    %233 = vector.broadcast %217 : vector<1x32xf32> to vector<8x32xf32>
    %234 = arith.addf %232, %233 : vector<8x32xf32>
    %cst_43 = arith.constant 0.000000e+00 : f32
    %235 = vector.broadcast %cst_43 : f32 to vector<8x32xf32>
    %236 = arith.maximumf %234, %235 : vector<8x32xf32>
    %c0_44 = arith.constant 0 : index
    %c0_45 = arith.constant 0 : index
    %237 = vector.load %arg5[%c0_44, %c0_45] : memref<32x1xf32, #tpu.memory_space<vmem>>, vector<32x1xf32>
    %cst_46 = arith.constant dense<0.000000e+00> : vector<8x1xf32>
    %238 = tpu.matmul %236, %237, %cst_46 {dimension_numbers = #tpu.dot_dimension_numbers<[1], [0], [0], [1], [0, 0, 1, 1], [], []>} : vector<8x32xf32>, vector<32x1xf32>, vector<8x1xf32> -> vector<8x1xf32>
    %239 = vector.broadcast %218 : vector<1x1xf32> to vector<8x1xf32>
    %240 = arith.addf %238, %239 : vector<8x1xf32>
    %c0_47 = arith.constant 0 : index
    %c0_48 = arith.constant 0 : index
    %241 = vector.load %arg7[%c0_47, %c0_48] : memref<8x1xf32, #tpu.memory_space<vmem>>, vector<8x1xf32>
    tpu.vector_store %arg7[%c0_47, %c0_48], %240 {strides = array<i32>} : memref<8x1xf32, #tpu.memory_space<vmem>>, vector<8x1xf32>,
    return
  }
}

</mosaic_0001>

<bundles_post_ra>
// kernel: attention_network_forward.1
= control target key start
LH: loop header
LB: loop body
LE: loop exit
PB: predicated region body
PF: predicated region fallthrough
CT: control target
= control target key end

     0   :  { %v2285_v3 = vmov 0.0   ;;  %vm71_vm0 = vcmask 261120   ;;  %v61_v41 = vlaneseq  ;;  %vm209_vm1 = vcmask 523264   ;;  %s2287_s21 = smov 96   ;;  %s3007_s1 = inlined_call_operand.vmem [shape: f32[97,256], index: 1, kind: input, shape index: {}]   ;;  %s3008_s0 = inlined_call_operand.vmem [shape: f32[64,32], index: 0, kind: input, shape index: {}]   ;;  %s3009_s2 = inlined_call_operand.vmem [shape: f32[32,512], index: 2, kind: input, shape index: {}]   ;;  %s3010_s3 = inlined_call_operand.vmem [shape: f32[512,128], index: 3, kind: input, shape index: {}]   ;;  %s3011_s6 = inlined_call_operand.vmem [shape: f32[1,673], index: 6, kind: input, shape index: {}]   ;;  %s3012_s4 = inlined_call_operand.vmem [shape: f32[128,32], index: 4, kind: input, shape index: {}]   ;;  %s3013_s5 = inlined_call_operand.vmem [shape: f32[32,1], index: 5, kind: input, shape index: {}]   ;;  %s3014_s7 = inlined_call_operand.vmem [shape: f32[8,1], index: 7, kind: output, shape index: {}]  }
   0x1   :  { %v27_v0 = vld [vmem:[%s3007_s1 + $0x8] sm:$0xff]  ;;  %v29_v1 = vld [vmem:[%s3007_s1 + $0x18] sm:$0xff]  ;;  %v26_v2 = vld [vmem:[%s3007_s1] sm:$0xff]  ;;  %160 = vmatprep.mubr.f32.mxu0 %v2285_v3  ;;  %184 = vmatprep.mubr.f32.mxu1 %v2285_v3  ;;  %vm2289_vm2 = vmmov 0   ;;  %vm1703_vm3 = vcmask 7168  }
   0x2   :  { %v1884_v4 = vpack.c.bf16 %v29_v1, %v27_v0  ;;  %v28_v5 = vld [vmem:[%s3007_s1 + $0x10] sm:$0xff]  ;;  %v31_v6 = vld [vmem:[%s3007_s1 + $0x28] sm:$0xff]  ;;  %v33_v7 = vld [vmem:[%s3007_s1 + $0x38] sm:$0xff]  ;;  %v2459_v42 = vshrl.u32 %v61_v41, 7 }
   0x3   :  { %v1886_v8 = vpack.c.bf16 %v28_v5, %v26_v2  ;;  %v1888_v9 = vpack.c.bf16 %v33_v7, %v31_v6  ;;  %v30_v10 = vld [vmem:[%s3007_s1 + $0x20] sm:$0xff]  ;;  %v32_v11 = vld [vmem:[%s3007_s1 + $0x30] sm:$0xff]  ;;  %v35_v12 = vld [vmem:[%s3007_s1 + $0x48] sm:$0xff] }
   0x4   :  { %1885 = vmatprep.subr.bf16.mxu0 %v1884_v4  ;;  %v37_v13 = vld [vmem:[%s3007_s1 + $0x58] sm:$0xff]  ;;  %2130 = vmatprep.subr.bf16.mxu1 %v1884_v4  ;;  %v1890_v14 = vpack.c.bf16 %v32_v11, %v30_v10  ;;  %v34_v16 = vld [vmem:[%s3007_s1 + $0x40] sm:$0xff]  ;;  %v36_v17 = vld [vmem:[%s3007_s1 + $0x50] sm:$0xff]  ;;  %v63_v43 = vsub.s32 0, %v2459_v42  ;;  %v67_v50 = vsub.s32 1, %v2459_v42 }
   0x5   :  { %1887 = vmatpush1.bf16.msra.mxu0 %v1886_v8  ;;  %2132 = vmatpush1.bf16.msra.mxu1 %v1886_v8  ;;  %v2362_v15 = vpack.c.bf16 %v37_v13, %v35_v12  ;;  %v39_v18 = vld [vmem:[%s3007_s1 + $0x68] sm:$0xff]  ;;  %v41_v19 = vld [vmem:[%s3007_s1 + $0x78] sm:$0xff]  ;;  %v52_v20 = vld [vmem:[%s3008_s0] sm:$0xff]  ;;  %v2379_v21 = vpack.c.bf16 %v36_v17, %v34_v16 }
   0x6   :  { %1889 = vmatprep.subr.bf16.mxu0 %v1888_v9  ;;  %2131 = vmatprep.subr.bf16.mxu1 %v1888_v9  ;;  %v2382_v22 = vpack.c.bf16 %v41_v19, %v39_v18  ;;  %v38_v23 = vld [vmem:[%s3007_s1 + $0x60] sm:$0xff]  ;;  %v40_v24 = vld [vmem:[%s3007_s1 + $0x70] sm:$0xff]  ;;  %v43_v25 = vld [vmem:[%s3007_s1 + $0x88] sm:$0xff] }
   0x7   :  { %v45_v26 = vld [vmem:[%s3007_s1 + $0x98] sm:$0xff]  ;;  %v53_v27 = vld [vmem:[%s3008_s0 + $0x8] sm:$0xff]  ;;  %v2402_v28 = vpack.c.bf16 %v40_v24, %v38_v23  ;;  %v42_v30 = vld [vmem:[%s3007_s1 + $0x80] sm:$0xff] }
   0x8   :  { %v2405_v29 = vpack.c.bf16 %v45_v26, %v43_v25  ;;  %v44_v31 = vld [vmem:[%s3007_s1 + $0x90] sm:$0xff]  ;;  %v47_v32 = vld [vmem:[%s3007_s1 + $0xa8] sm:$0xff]  ;;  %v49_v33 = vld [vmem:[%s3007_s1 + $0xb8] sm:$0xff] }
   0x9   :  { %1891 = vmatpush1.bf16.msra.mxu0 %v1890_v14  ;;  %2133 = vmatpush1.bf16.msra.mxu1 %v1890_v14  ;;  %v54_v34 = vld [vmem:[%s3008_s0 + $0x10] sm:$0xff]  ;;  %v2425_v35 = vpack.c.bf16 %v44_v31, %v42_v30  ;;  %v2428_v36 = vpack.c.bf16 %v49_v33, %v47_v32  ;;  %v46_v37 = vld [vmem:[%s3007_s1 + $0xa0] sm:$0xff]  ;;  %v55_v39 = vld [vmem:[%s3008_s0 + $0x18] sm:$0xff] }
   0xa   :  { %1893 = vmatprep.subr.bf16.mxu0 %v2362_v15  ;;  %v48_v38 = vld [vmem:[%s3007_s1 + $0xb0] sm:$0xff]  ;;  %v1709_v44 = vld [vmem:[%s3007_s1 + $0xc0] ss:$8 sm:$0x3]  ;;  %s2286_s1 = smov 64  }
   0xb   :  { %v2442_v40 = vpack.c.bf16 %v48_v38, %v46_v37  ;;  %v2467_v45 = vrot.slane %v1709_v44, %v63_v43  ;;  %v2473_v51 = vrot.slane %v1709_v44, %v67_v50 }
   0xc   :  { %1710 = vmatmul.mubr.msk.f32.vlgmr.msra.gmra.mrb[0].mxu0 %vm71_vm0, %v52_v20 }
   0xd   :  { %1895 = vmatpush1.bf16.msra.mxu0 %v2379_v21  ;;  %166 = vmatprep.mubr.f32.mxu0 %v2285_v3 }
   0xe   :  { %1897 = vmatprep.subr.bf16.mxu0 %v2382_v22 }
  0x10   :  { %1711 = vmatmul.mubr.msk.f32.gmra.mrb[2].mxu0 %vm71_vm0, %v53_v27 }
  0x11   :  { %1899 = vmatpush1.bf16.msra.mxu0 %v2402_v28  ;;  %172 = vmatprep.mubr.f32.mxu0 %v2285_v3 }
  0x12   :  { %1901 = vmatprep.subr.bf16.mxu0 %v2405_v29 }
  0x14   :  { %1712 = vmatmul.mubr.msk.f32.gmra.mrb[4].mxu0 %vm71_vm0, %v54_v34 }
  0x15   :  { %1903 = vmatpush1.bf16.msra.mxu0 %v2425_v35  ;;  %178 = vmatprep.mubr.f32.mxu0 %v2285_v3 }
  0x16   :  { %1905 = vmatprep.subr.bf16.mxu0 %v2428_v36 }
  0x18   :  { %1713 = vmatmul.mubr.msk.f32.gmra.mrb[6].mxu0 %vm71_vm0, %v55_v39 }
  0x19   :  { %1907 = vmatpush1.bf16.msra.mxu0 %v2442_v40  ;;  %277 = vmatprep.mubr.f32.mxu0 %v2285_v3 }
  0x1a   :  { %1909 = vmatprep.subr.bf16.mxu0 %v2362_v15 }
  0x1c   :  { %278 = vmatmul.mubr.f32.vlgmr.msra.gmra.mrb[0].mxu0 %v2285_v3 }
  0x1d   :  { %1911 = vmatpush1.bf16.msra.mxu0 %v2379_v21  ;;  %375 = vmatprep.mubr.f32.mxu0 %v2285_v3 }
  0x1e   :  { %1913 = vmatprep.subr.bf16.mxu0 %v2382_v22 }
  0x21   :  { %1915 = vmatpush1.bf16.msra.mxu0 %v2402_v28 }
  0x22   :  { %1917 = vmatprep.subr.bf16.mxu0 %v2405_v29 }
  0x25   :  { %1919 = vmatpush1.bf16.msra.mxu0 %v2425_v35 }
  0x26   :  { %1921 = vmatprep.subr.bf16.mxu0 %v2428_v36 }
  0x29   :  { %1923 = vmatpush1.bf16.msra.mxu0 %v2442_v40 }
  0x2a   :  { %1925 = vmatprep.subr.bf16.mxu0 %v2362_v15 }
  0xef   :  { %v279_v46 = vpop.f32.mrb[0].mxu0 }
  0xf0   :  { %v2134_v47 = vadd.f32 %v279_v46, %v2467_v45  ;;  %v281_v48 = vpop.f32.mrb[1].mxu0 }
  0xf1   :  { %v2135_v52 = vadd.f32 %v281_v48, %v2473_v51 }
  0xf2   :  { %v1718_v49 = vmul.f32 -1.442695, %v2134_v47 }
  0xf3   :  { %v1719_v58 = vmul.f32 -1.442695, %v2135_v52 }
  0xf4   :  { %2171 = vpow2.f32 %v1718_v49 }
  0xf5   :  { %2173 = vtanh.f32 %v2135_v52 }
  0xfe   :  { %v2172_v53 = vpop.eup %2171 }
  0xff   :  { %v292_v54 = vadd.f32 1.0, %v2172_v53  ;;  %v2174_v55 = vpop.eup %2173 }
 0x101   :  { %2175 = vrcp.f32 %v292_v54 }
 0x102   :  { %2177 = vpow2.f32 %v1719_v58 }
 0x10b   :  { %v2176_v56 = vpop.eup %2175 }
 0x10c   :  { %v300_v57 = vmul.f32 %v2176_v56, %v2174_v55  ;;  %v2178_v59 = vpop.eup %2177  ;;  %v299_v61 = vmul.f32 0.0, %v2176_v56 }
 0x10d   :  { %v293_v60 = vadd.f32 1.0, %v2178_v59 }
 0x10e   :  { %302 = vrot.lane.b32.xlu0 %v300_v57, %s2286_s1 }
 0x10f   :  { %2179 = vrcp.f32 %v293_v60 }
 0x119   :  { %v2180_v0 = vpop.eup %2179 }
 0x180   :  { %v303_v62 = vpop.permute.xlu0 %302 }
 0x181   :  { %v305_v63 = vadd.f32 %v303_v62, %v299_v61  ;;  %v56_v62 = vld [vmem:[%s3008_s0 + $0x20] sm:$0xff] }
 0x182   :  { %1714 = vmatmul.mubr.msk.f32.vlgmr.msra.gmra.mrb[0].mxu1 %vm71_vm0, %v56_v62 }
 0x183   :  { %2181 = vtanh.f32 %v305_v63  ;;  %190 = vmatprep.mubr.f32.mxu1 %v2285_v3 }
 0x18d   :  { %v2182_v1 = vpop.eup %2181 }
 0x18e   :  { %v2477_v2 = vmul.f32 %v2182_v1, %v2180_v0 }
 0x190   :  { %1720 = vmatmul.mubr.msk.f32.vlgmr.msra.gmra.mrb[2].mxu0 %vm209_vm1, %v2477_v2 }
 0x191   :  { %1927 = vmatpush1.bf16.msra.mxu0 %v2379_v21  ;;  %473 = vmatprep.mubr.f32.mxu0 %v2285_v3 }
 0x192   :  { %1929 = vmatprep.subr.bf16.mxu0 %v2382_v22 }
 0x195   :  { %1931 = vmatpush1.bf16.msra.mxu0 %v2402_v28 }
 0x196   :  { %1933 = vmatprep.subr.bf16.mxu0 %v2405_v29 }
 0x199   :  { %1935 = vmatpush1.bf16.msra.mxu0 %v2425_v35 }
 0x19a   :  { %1937 = vmatprep.subr.bf16.mxu0 %v2428_v36 }
 0x19d   :  { %1939 = vmatpush1.bf16.msra.mxu0 %v2442_v40 }
 0x19e   :  { %1941 = vmatprep.subr.bf16.mxu0 %v2362_v15 }
 0x263   :  { %v377_v4 = vpop.f32.mrb[2].mxu0 }
 0x264   :  { %v2136_v5 = vadd.f32 %v377_v4, %v2467_v45  ;;  %v379_v6 = vpop.f32.mrb[3].mxu0 }
 0x265   :  { %v2137_v8 = vadd.f32 %v379_v6, %v2473_v51 }
 0x266   :  { %v1721_v7 = vmul.f32 -1.442695, %v2136_v5 }
 0x267   :  { %v1722_v14 = vmul.f32 -1.442695, %v2137_v8 }
 0x268   :  { %2183 = vpow2.f32 %v1721_v7 }
 0x269   :  { %2185 = vtanh.f32 %v2137_v8 }
 0x272   :  { %v2184_v9 = vpop.eup %2183 }
 0x273   :  { %v390_v10 = vadd.f32 1.0, %v2184_v9  ;;  %v2186_v11 = vpop.eup %2185 }
 0x275   :  { %2187 = vrcp.f32 %v390_v10 }
 0x276   :  { %2189 = vpow2.f32 %v1722_v14 }
 0x27f   :  { %v2188_v12 = vpop.eup %2187 }
 0x280   :  { %v398_v13 = vmul.f32 %v2188_v12, %v2186_v11  ;;  %v2190_v16 = vpop.eup %2189  ;;  %v397_v18 = vmul.f32 %v2188_v12, %v305_v63 }
 0x281   :  { %v391_v17 = vadd.f32 1.0, %v2190_v16 }
 0x282   :  { %400 = vrot.lane.b32.xlu0 %v398_v13, %s2286_s1  ;;  %v186_v13 = vpop.f32.mrb[0].mxu1 }
 0x283   :  { %2191 = vrcp.f32 %v391_v17  ;;  %v188_v14 = vpop.f32.mrb[1].mxu1  ;;  %v187_v16 = vadd.f32 %v186_v13, %v2467_v45 }
 0x284   :  { %v189_v17 = vadd.f32 %v188_v14, %v2473_v51 }
 0x28d   :  { %v2192_v23 = vpop.eup %2191 }
 0x2f4   :  { %v401_v19 = vpop.permute.xlu0 %400 }
 0x2f5   :  { %v403_v20 = vadd.f32 %v401_v19, %v397_v18 }
 0x2f7   :  { %2193 = vtanh.f32 %v403_v20 }
 0x301   :  { %v2194_v24 = vpop.eup %2193 }
 0x302   :  { %v2493_v25 = vmul.f32 %v2194_v24, %v2192_v23 }
 0x304   :  { %1723 = vmatmul.mubr.msk.f32.vlgmr.msra.gmra.mrb[4].mxu0 %vm209_vm1, %v2493_v25 }
 0x305   :  { %1943 = vmatpush1.bf16.msra.mxu0 %v2379_v21  ;;  %571 = vmatprep.mubr.f32.mxu0 %v2285_v3 }
 0x306   :  { %1945 = vmatprep.subr.bf16.mxu0 %v2382_v22 }
 0x309   :  { %1947 = vmatpush1.bf16.msra.mxu0 %v2402_v28 }
 0x30a   :  { %1949 = vmatprep.subr.bf16.mxu0 %v2405_v29 }
 0x30d   :  { %1951 = vmatpush1.bf16.msra.mxu0 %v2425_v35 }
 0x30e   :  { %1953 = vmatprep.subr.bf16.mxu0 %v2428_v36 }
 0x311   :  { %1955 = vmatpush1.bf16.msra.mxu0 %v2442_v40 }
 0x312   :  { %1957 = vmatprep.subr.bf16.mxu0 %v2362_v15 }
 0x3d7   :  { %v475_v26 = vpop.f32.mrb[4].mxu0 }
 0x3d8   :  { %v2138_v27 = vadd.f32 %v475_v26, %v2467_v45  ;;  %v477_v30 = vpop.f32.mrb[5].mxu0 }
 0x3d9   :  { %v2139_v32 = vadd.f32 %v477_v30, %v2473_v51  ;;  %v57_v30 = vld [vmem:[%s3008_s0 + $0x28] sm:$0xff] }
 0x3da   :  { %v1724_v31 = vmul.f32 -1.442695, %v2138_v27  ;;  %1715 = vmatmul.mubr.msk.f32.gmra.mrb[2].mxu1 %vm71_vm0, %v57_v30 }
 0x3db   :  { %v1725_v41 = vmul.f32 -1.442695, %v2139_v32  ;;  %196 = vmatprep.mubr.f32.mxu1 %v2285_v3 }
 0x3dc   :  { %2195 = vpow2.f32 %v1724_v31 }
 0x3dd   :  { %2197 = vtanh.f32 %v2139_v32 }
 0x3e6   :  { %v2196_v33 = vpop.eup %2195 }
 0x3e7   :  { %v488_v34 = vadd.f32 1.0, %v2196_v33  ;;  %v2198_v37 = vpop.eup %2197 }
 0x3e9   :  { %2199 = vrcp.f32 %v488_v34 }
 0x3ea   :  { %2201 = vpow2.f32 %v1725_v41 }
 0x3f3   :  { %v2200_v38 = vpop.eup %2199 }
 0x3f4   :  { %v496_v39 = vmul.f32 %v2200_v38, %v2198_v37  ;;  %v2202_v44 = vpop.eup %2201  ;;  %v495_v47 = vmul.f32 %v2200_v38, %v403_v20 }
 0x3f5   :  { %v489_v46 = vadd.f32 1.0, %v2202_v44 }
 0x3f6   :  { %498 = vrot.lane.b32.xlu1 %v496_v39, %s2286_s1 }
 0x3f7   :  { %2203 = vrcp.f32 %v489_v46 }
 0x401   :  { %v2204_v52 = vpop.eup %2203 }
 0x468   :  { %v499_v48 = vpop.permute.xlu1 %498 }
 0x469   :  { %v501_v49 = vadd.f32 %v499_v48, %v495_v47 }
 0x46b   :  { %2205 = vtanh.f32 %v501_v49 }
 0x475   :  { %v2206_v53 = vpop.eup %2205 }
 0x476   :  { %v2509_v54 = vmul.f32 %v2206_v53, %v2204_v52 }
 0x478   :  { %1726 = vmatmul.mubr.msk.f32.vlgmr.msra.gmra.mrb[6].mxu0 %vm209_vm1, %v2509_v54 }
 0x479   :  { %1959 = vmatpush1.bf16.msra.mxu0 %v2379_v21  ;;  %669 = vmatprep.mubr.f32.mxu0 %v2285_v3 }
 0x47a   :  { %1961 = vmatprep.subr.bf16.mxu0 %v2382_v22 }
 0x47d   :  { %1963 = vmatpush1.bf16.msra.mxu0 %v2402_v28 }
 0x47e   :  { %1965 = vmatprep.subr.bf16.mxu0 %v2405_v29 }
 0x481   :  { %1967 = vmatpush1.bf16.msra.mxu0 %v2425_v35 }
 0x482   :  { %1969 = vmatprep.subr.bf16.mxu0 %v2428_v36 }
 0x485   :  { %1971 = vmatpush1.bf16.msra.mxu0 %v2442_v40 }
 0x486   :  { %1973 = vmatprep.subr.bf16.mxu0 %v2362_v15 }
 0x54b   :  { %v573_v55 = vpop.f32.mrb[6].mxu0 }
 0x54c   :  { %v2140_v56 = vadd.f32 %v573_v55, %v2467_v45  ;;  %v575_v57 = vpop.f32.mrb[7].mxu0 }
 0x54d   :  { %v2141_v59 = vadd.f32 %v575_v57, %v2473_v51 }
 0x54e   :  { %v1727_v58 = vmul.f32 -1.442695, %v2140_v56 }
 0x54f   :  { %v1728_v4 = vmul.f32 -1.442695, %v2141_v59 }
 0x550   :  { %2207 = vpow2.f32 %v1727_v58 }
 0x551   :  { %2209 = vtanh.f32 %v2141_v59 }
 0x55a   :  { %v2208_v60 = vpop.eup %2207 }
 0x55b   :  { %v586_v61 = vadd.f32 1.0, %v2208_v60  ;;  %v2210_v63 = vpop.eup %2209 }
 0x55d   :  { %2211 = vrcp.f32 %v586_v61 }
 0x55e   :  { %2213 = vpow2.f32 %v1728_v4 }
 0x567   :  { %v2212_v0 = vpop.eup %2211 }
 0x568   :  { %v594_v1 = vmul.f32 %v2212_v0, %v2210_v63  ;;  %v2214_v5 = vpop.eup %2213  ;;  %v593_v7 = vmul.f32 %v2212_v0, %v501_v49  ;;  %v192_v49 = vpop.f32.mrb[2].mxu1 }
 0x569   :  { %v587_v6 = vadd.f32 1.0, %v2214_v5  ;;  %v194_v52 = vpop.f32.mrb[3].mxu1  ;;  %v193_v53 = vadd.f32 %v192_v49, %v2467_v45 }
 0x56a   :  { %596 = vrot.lane.b32.xlu1 %v594_v1, %s2286_s1  ;;  %v195_v55 = vadd.f32 %v194_v52, %v2473_v51 }
 0x56b   :  { %2215 = vrcp.f32 %v587_v6 }
 0x575   :  { %v2216_v10 = vpop.eup %2215 }
 0x5dc   :  { %v597_v8 = vpop.permute.xlu1 %596 }
 0x5dd   :  { %v599_v9 = vadd.f32 %v597_v8, %v593_v7 }
 0x5df   :  { %2217 = vtanh.f32 %v599_v9 }
 0x5e9   :  { %v2218_v11 = vpop.eup %2217 }
 0x5ea   :  { %v2530_v12 = vmul.f32 %v2218_v11, %v2216_v10 }
 0x5ec   :  { %1729 = vmatmul.mubr.msk.f32.vlgmr.msra.gmra.mrb[8].mxu0 %vm209_vm1, %v2530_v12 }
 0x5ed   :  { %1975 = vmatpush1.bf16.msra.mxu0 %v2379_v21  ;;  %767 = vmatprep.mubr.f32.mxu0 %v2285_v3 }
 0x5ee   :  { %1977 = vmatprep.subr.bf16.mxu0 %v2382_v22 }
 0x5f1   :  { %1979 = vmatpush1.bf16.msra.mxu0 %v2402_v28 }
 0x5f2   :  { %1981 = vmatprep.subr.bf16.mxu0 %v2405_v29 }
 0x5f5   :  { %1983 = vmatpush1.bf16.msra.mxu0 %v2425_v35 }
 0x5f6   :  { %1985 = vmatprep.subr.bf16.mxu0 %v2428_v36 }
 0x5f9   :  { %1987 = vmatpush1.bf16.msra.mxu0 %v2442_v40 }
 0x5fa   :  { %1989 = vmatprep.subr.bf16.mxu0 %v2362_v15 }
 0x6bf   :  { %v671_v18 = vpop.f32.mrb[8].mxu0 }
 0x6c0   :  { %v676_v19 = vadd.f32 %v671_v18, %v187_v16  ;;  %v673_v20 = vpop.f32.mrb[9].mxu0 }
 0x6c1   :  { %v677_v23 = vadd.f32 %v673_v20, %v189_v17 }
 0x6c2   :  { %v1730_v24 = vmul.f32 -1.442695, %v676_v19 }
 0x6c3   :  { %v1731_v34 = vmul.f32 -1.442695, %v677_v23 }
 0x6c4   :  { %2219 = vpow2.f32 %v1730_v24 }
 0x6c5   :  { %2221 = vtanh.f32 %v677_v23 }
 0x6ce   :  { %v2220_v26 = vpop.eup %2219 }
 0x6cf   :  { %v684_v27 = vadd.f32 1.0, %v2220_v26  ;;  %v2222_v31 = vpop.eup %2221 }
 0x6d1   :  { %2223 = vrcp.f32 %v684_v27 }
 0x6d2   :  { %2225 = vpow2.f32 %v1731_v34 }
 0x6db   :  { %v2224_v32 = vpop.eup %2223 }
 0x6dc   :  { %v692_v33 = vmul.f32 %v2224_v32, %v2222_v31  ;;  %v2226_v37 = vpop.eup %2225  ;;  %v691_v39 = vmul.f32 %v2224_v32, %v599_v9 }
 0x6dd   :  { %v685_v38 = vadd.f32 1.0, %v2226_v37 }
 0x6de   :  { %694 = vrot.lane.b32.xlu0 %v692_v33, %s2286_s1 }
 0x6df   :  { %2227 = vrcp.f32 %v685_v38 }
 0x6e9   :  { %v2228_v46 = vpop.eup %2227 }
 0x750   :  { %v695_v41 = vpop.permute.xlu0 %694 }
 0x751   :  { %v697_v44 = vadd.f32 %v695_v41, %v691_v39 }
 0x753   :  { %2229 = vtanh.f32 %v697_v44 }
 0x75d   :  { %v2230_v47 = vpop.eup %2229 }
 0x75e   :  { %v2551_v48 = vmul.f32 %v2230_v47, %v2228_v46 }
 0x760   :  { %1732 = vmatmul.mubr.msk.f32.vlgmr.msra.gmra.mrb[10].mxu0 %vm209_vm1, %v2551_v48 }
 0x761   :  { %1991 = vmatpush1.bf16.msra.mxu0 %v2379_v21  ;;  %865 = vmatprep.mubr.f32.mxu0 %v2285_v3 }
 0x762   :  { %1993 = vmatprep.subr.bf16.mxu0 %v2382_v22 }
 0x765   :  { %1995 = vmatpush1.bf16.msra.mxu0 %v2402_v28 }
 0x766   :  { %1997 = vmatprep.subr.bf16.mxu0 %v2405_v29 }
 0x769   :  { %1999 = vmatpush1.bf16.msra.mxu0 %v2425_v35 }
 0x76a   :  { %2001 = vmatprep.subr.bf16.mxu0 %v2428_v36 }
 0x76d   :  { %2003 = vmatpush1.bf16.msra.mxu0 %v2442_v40 }
 0x76e   :  { %2005 = vmatprep.subr.bf16.mxu0 %v2362_v15  ;;  %v58_v15 = vld [vmem:[%s3008_s0 + $0x30] sm:$0xff] }
 0x76f   :  { %1716 = vmatmul.mubr.msk.f32.gmra.mrb[4].mxu1 %vm71_vm0, %v58_v15 }
 0x770   :  { %202 = vmatprep.mubr.f32.mxu1 %v2285_v3 }
 0x833   :  { %v769_v56 = vpop.f32.mrb[10].mxu0 }
 0x834   :  { %v774_v57 = vadd.f32 %v769_v56, %v193_v53  ;;  %v771_v58 = vpop.f32.mrb[11].mxu0 }
 0x835   :  { %v775_v59 = vadd.f32 %v771_v58, %v195_v55 }
 0x836   :  { %v1733_v60 = vmul.f32 -1.442695, %v774_v57 }
 0x837   :  { %v1734_v4 = vmul.f32 -1.442695, %v775_v59 }
 0x838   :  { %2231 = vpow2.f32 %v1733_v60 }
 0x839   :  { %2233 = vtanh.f32 %v775_v59 }
 0x842   :  { %v2232_v61 = vpop.eup %2231  ;;  %v198_v14 = vpop.f32.mrb[4].mxu1 }
 0x843   :  { %v782_v62 = vadd.f32 1.0, %v2232_v61  ;;  %v2234_v63 = vpop.eup %2233  ;;  %v200_v16 = vpop.f32.mrb[5].mxu1  ;;  %v199_v17 = vadd.f32 %v198_v14, %v2467_v45 }
 0x845   :  { %2235 = vrcp.f32 %v782_v62 }
 0x846   :  { %2237 = vpow2.f32 %v1734_v4 }
 0x84f   :  { %v2236_v0 = vpop.eup %2235 }
 0x850   :  { %v790_v1 = vmul.f32 %v2236_v0, %v2234_v63  ;;  %v2238_v5 = vpop.eup %2237  ;;  %v789_v7 = vmul.f32 %v2236_v0, %v697_v44 }
 0x851   :  { %v783_v6 = vadd.f32 1.0, %v2238_v5 }
 0x852   :  { %792 = vrot.lane.b32.xlu1 %v790_v1, %s2286_s1 }
 0x853   :  { %2239 = vrcp.f32 %v783_v6 }
 0x85d   :  { %v2240_v10 = vpop.eup %2239 }
 0x8c4   :  { %v793_v8 = vpop.permute.xlu1 %792 }
 0x8c5   :  { %v795_v9 = vadd.f32 %v793_v8, %v789_v7 }
 0x8c7   :  { %2241 = vtanh.f32 %v795_v9 }
 0x8d1   :  { %v2242_v11 = vpop.eup %2241 }
 0x8d2   :  { %v2572_v13 = vmul.f32 %v2242_v11, %v2240_v10 }
 0x8d4   :  { %1735 = vmatmul.mubr.msk.f32.vlgmr.msra.gmra.mrb[12].mxu0 %vm209_vm1, %v2572_v13 }
 0x8d5   :  { %2007 = vmatpush1.bf16.msra.mxu0 %v2379_v21  ;;  %963 = vmatprep.mubr.f32.mxu0 %v2285_v3  ;;  %v201_v21 = vadd.f32 %v200_v16, %v2473_v51 }
 0x8d6   :  { %2009 = vmatprep.subr.bf16.mxu0 %v2382_v22 }
 0x8d9   :  { %2011 = vmatpush1.bf16.msra.mxu0 %v2402_v28 }
 0x8da   :  { %2013 = vmatprep.subr.bf16.mxu0 %v2405_v29 }
 0x8dd   :  { %2015 = vmatpush1.bf16.msra.mxu0 %v2425_v35  ;;  %v59_v35 = vld [vmem:[%s3008_s0 + $0x38] sm:$0xff] }
 0x8de   :  { %2017 = vmatprep.subr.bf16.mxu0 %v2428_v36  ;;  %1717 = vmatmul.mubr.msk.f32.gmra.mrb[6].mxu1 %vm71_vm0, %v59_v35 }
 0x8df   :  { %1237 = vmatprep.mubr.f32.mxu1 %v2285_v3 }
 0x8e1   :  { %2019 = vmatpush1.bf16.msra.mxu0 %v2442_v40 }
 0x9a7   :  { %v867_v18 = vpop.f32.mrb[12].mxu0 }
 0x9a8   :  { %v872_v19 = vadd.f32 %v867_v18, %v199_v17  ;;  %v869_v20 = vpop.f32.mrb[13].mxu0 }
 0x9a9   :  { %v873_v22 = vadd.f32 %v869_v20, %v201_v21 }
 0x9aa   :  { %v1736_v23 = vmul.f32 -1.442695, %v872_v19 }
 0x9ab   :  { %v1737_v26 = vmul.f32 -1.442695, %v873_v22 }
 0x9ac   :  { %2243 = vpow2.f32 %v1736_v23 }
 0x9ad   :  { %2245 = vtanh.f32 %v873_v22 }
 0x9b1   :  { %v204_v39 = vpop.f32.mrb[6].mxu1 }
 0x9b2   :  { %v206_v41 = vpop.f32.mrb[7].mxu1  ;;  %v205_v44 = vadd.f32 %v204_v39, %v2467_v45  ;;  %v1137_v39 = vld [vmem:[%s3009_s2 + $0x20] sm:$0xff] }
 0x9b3   :  { %v207_v46 = vadd.f32 %v206_v41, %v2473_v51  ;;  %v1142_v41 = vld [vmem:[%s3009_s2 + $0x48] sm:$0xff] }
 0x9b6   :  { %v2244_v28 = vpop.eup %2243 }
 0x9b7   :  { %v880_v29 = vadd.f32 1.0, %v2244_v28  ;;  %v2246_v36 = vpop.eup %2245 }
 0x9b9   :  { %2247 = vrcp.f32 %v880_v29 }
 0x9ba   :  { %2249 = vpow2.f32 %v1737_v26 }
 0x9c3   :  { %v2248_v40 = vpop.eup %2247 }
 0x9c4   :  { %v888_v24 = vmul.f32 %v2248_v40, %v2246_v36  ;;  %v2250_v27 = vpop.eup %2249  ;;  %v887_v31 = vmul.f32 %v2248_v40, %v795_v9 }
 0x9c5   :  { %v881_v30 = vadd.f32 1.0, %v2250_v27 }
 0x9c6   :  { %890 = vrot.lane.b32.xlu0 %v888_v24, %s2286_s1 }
 0x9c7   :  { %2251 = vrcp.f32 %v881_v30 }
 0x9ca   :  { %1004 = vrot.lane.b32.xlu0 %v2572_v13, %s2287_s21 }
 0x9ce   :  { %1012 = vrot.lane.b32.xlu0 %v2530_v12, %s2287_s21 }
 0x9d1   :  { %v2252_v34 = vpop.eup %2251 }
 0xa38   :  { %v891_v32 = vpop.permute.xlu0 %890 }
 0xa39   :  { %v893_v33 = vadd.f32 %v891_v32, %v887_v31 }
 0xa3b   :  { %2253 = vtanh.f32 %v893_v33 }
 0xa3c   :  { %v1005_v5 = vpop.permute.xlu0 %1004 }
 0xa3d   :  { %v2620_v17 = vadd.f32 %v1005_v5, %v2509_v54 }
 0xa40   :  { %v1013_v7 = vpop.permute.xlu0 %1012 }
 0xa41   :  { %v2617_v16 = vadd.f32 %v1013_v7, %v2551_v48 }
 0xa45   :  { %v2254_v37 = vpop.eup %2253 }
 0xa46   :  { %v895_v38 = vmul.f32 %v2254_v37, %v2252_v34  ;;  %v1138_v34 = vld [vmem:[%s3009_s2 + $0x28] sm:$0xff]  ;;  %v1133_v37 = vld [vmem:[%s3009_s2] sm:$0xff] }
 0xa48   :  { %1738 = vmatmul.mubr.msk.f32.vlgmr.msra.gmra.mrb[14].mxu0 %vm209_vm1, %v895_v38 }
 0xb1b   :  { %v965_v47 = vpop.f32.mrb[14].mxu0 }
 0xb1c   :  { %v970_v49 = vadd.f32 %v965_v47, %v205_v44  ;;  %v967_v52 = vpop.f32.mrb[15].mxu0  ;;  %v1146_v44 = vld [vmem:[%s3009_s2 + $0x68] sm:$0xff] }
 0xb1d   :  { %v971_v53 = vadd.f32 %v967_v52, %v207_v46  ;;  %v2022_v46 = vpack.c.bf16 %v1137_v39, %v1133_v37  ;;  %v2024_v47 = vpack.c.bf16 %v1146_v44, %v1142_v41  ;;  %v1145_v52 = vld [vmem:[%s3009_s2 + $0x60] sm:$0xff] }
 0xb1e   :  { %v1739_v55 = vmul.f32 -1.442695, %v970_v49  ;;  %v1141_v49 = vld [vmem:[%s3009_s2 + $0x40] sm:$0xff] }
 0xb1f   :  { %v1740_v45 = vmul.f32 -1.442695, %v971_v53 }
 0xb20   :  { %2255 = vpow2.f32 %v1739_v55  ;;  %v1140_v55 = vld [vmem:[%s3009_s2 + $0x38] sm:$0xff] }
 0xb21   :  { %2257 = vtanh.f32 %v971_v53  ;;  %v1136_v53 = vld [vmem:[%s3009_s2 + $0x18] sm:$0xff] }
 0xb2a   :  { %v2256_v56 = vpop.eup %2255 }
 0xb2b   :  { %v978_v57 = vadd.f32 1.0, %v2256_v56  ;;  %v2258_v58 = vpop.eup %2257  ;;  %v2026_v56 = vpack.c.bf16 %v1145_v52, %v1141_v49 }
 0xb2d   :  { %2259 = vrcp.f32 %v978_v57  ;;  %v2028_v57 = vpack.c.bf16 %v1140_v55, %v1136_v53 }
 0xb2e   :  { %2261 = vpow2.f32 %v1740_v45 }
 0xb37   :  { %v2260_v59 = vpop.eup %2259 }
 0xb38   :  { %v986_v60 = vmul.f32 %v2260_v59, %v2258_v58  ;;  %v2262_v51 = vpop.eup %2261  ;;  %v985_v62 = vmul.f32 %v2260_v59, %v893_v33 }
 0xb39   :  { %v979_v61 = vadd.f32 1.0, %v2262_v51 }
 0xb3a   :  { %988 = vrot.lane.b32.xlu1 %v986_v60, %s2286_s1 }
 0xb3b   :  { %2263 = vrcp.f32 %v979_v61 }
 0xb3e   :  { %1000 = vrot.lane.b32.xlu1 %v895_v38, %s2287_s21 }
 0xb42   :  { %1008 = vrot.lane.b32.xlu1 %v2551_v48, %s2287_s21 }
 0xb45   :  { %v2264_v0 = vpop.eup %2263 }
 0xb46   :  { %1016 = vrot.lane.b32.xlu1 %v2509_v54, %s2287_s21 }
 0xb4a   :  { %1024 = vrot.lane.b32.xlu1 %v2477_v2, %s2287_s21 }
 0xbac   :  { %v989_v15 = vpop.permute.xlu1 %988 }
 0xbad   :  { %v991_v63 = vadd.f32 %v989_v15, %v985_v62 }
 0xbaf   :  { %2265 = vtanh.f32 %v991_v63 }
 0xbb0   :  { %v1001_v6 = vpop.permute.xlu1 %1000 }
 0xbb1   :  { %v2611_v10 = vadd.f32 %v1001_v6, %v2493_v25 }
 0xbb4   :  { %v1009_v8 = vpop.permute.xlu1 %1008 }
 0xbb5   :  { %v2631_v54 = vadd.f32 %v1009_v8, %v2530_v12 }
 0xbb8   :  { %v1017_v48 = vpop.permute.xlu1 %1016 }
 0xbb9   :  { %v2266_v1 = vpop.eup %2265  ;;  %v2638_v40 = vadd.f32 %v1017_v48, %v2572_v13  ;;  %v1134_v13 = vld [vmem:[%s3009_s2 + $0x8] sm:$0xff] }
 0xbba   :  { %v993_v4 = vmul.f32 %v2266_v1, %v2264_v0 }
 0xbbc   :  { %995 = vrot.lane.b32.xlu0 %v993_v4, %s2287_s21  ;;  %v1025_v24 = vpop.permute.xlu1 %1024 }
 0xbbd   :  { %v2643_v30 = vadd.f32 %v1025_v24, %v993_v4 }
 0xbc0   :  { %1020 = vrot.lane.b32.xlu0 %v2493_v25, %s2287_s21 }
 0xc2e   :  { %v996_v9 = vpop.permute.xlu0 %995 }
 0xc2f   :  { %v998_v11 = vadd.f32 %v996_v9, %v993_v4  ;;  %v2614_v14 = vadd.f32 %v996_v9, %v2477_v2 }
 0xc31   :  { %v1029_v21 = vmul.f32 %v2611_v10, %v998_v11  ;;  %v1028_v18 = vmul.f32 %v2614_v14, %v998_v11  ;;  %v1032_v20 = vmul.f32 %v2617_v16, %v998_v11  ;;  %v1030_v23 = vmul.f32 %v2620_v17, %v998_v11 }
 0xc32   :  { %v1021_v19 = vpop.permute.xlu0 %1020  ;;  %v1031_v35 = vmul.f32 %v2631_v54, %v998_v11  ;;  %v1033_v12 = vmul.f32 %v2638_v40, %v998_v11  ;;  %v1035_v32 = vmul.f32 %v2643_v30, %v998_v11 }
 0xc33   :  { %v2625_v22 = vadd.f32 %v1021_v19, %v895_v38  ;;  %v1039_v25 = vsel %vm71_vm0, %v1029_v21, 0.0  ;;  %v1036_v2 = vsel %vm71_vm0, %v1028_v18, 0.0  ;;  %v1048_v28 = vsel %vm71_vm0, %v1032_v20, 0.0 }
 0xc34   :  { %1040 = vadd.xlane.f32.xlu1 %v1039_v25  ;;  %1037 = vadd.xlane.f32.xlu0 %v1036_v2  ;;  %v1042_v29 = vsel %vm71_vm0, %v1030_v23, 0.0  ;;  %v1045_v26 = vsel %vm71_vm0, %v1031_v35, 0.0  ;;  %v1051_v31 = vsel %vm71_vm0, %v1033_v12, 0.0  ;;  %v1057_v33 = vsel %vm71_vm0, %v1035_v32, 0.0 }
 0xc35   :  { %v1034_v36 = vmul.f32 %v2625_v22, %v998_v11  ;;  %v2020_v38 = vpack.c.bf16 %v1138_v34, %v1134_v13 }
 0xc37   :  { %v1054_v27 = vsel %vm71_vm0, %v1034_v36, 0.0  ;;  %2021 = vmatprep.subr.bf16.mxu1 %v2020_v38 }
 0xc38   :  { %1049 = vadd.xlane.f32.xlu1 %v1048_v28  ;;  %1043 = vadd.xlane.f32.xlu0 %v1042_v29 }
 0xc39   :  { %2023 = vmatpush1.bf16.msra.mxu1 %v2022_v46 }
 0xc3a   :  { %2025 = vmatprep.subr.bf16.mxu1 %v2024_v47 }
 0xc3c   :  { %1046 = vadd.xlane.f32.xlu0 %v1045_v26  ;;  %1055 = vadd.xlane.f32.xlu1 %v1054_v27 }
 0xc3d   :  { %2027 = vmatpush1.bf16.msra.mxu1 %v2026_v56 }
 0xc3e   :  { %2029 = vmatprep.subr.bf16.mxu1 %v2028_v57 }
 0xc40   :  { %1052 = vadd.xlane.f32.xlu0 %v1051_v31 }
 0xc44   :  { %1058 = vadd.xlane.f32.xlu0 %v1057_v33 }
 0xcc1   :  { %v1038_v58 = vpop.xlane.xlu0 %1037  ;;  %v1041_v59 = vpop.xlane.xlu1 %1040 }
 0xcc5   :  { %v1044_v60 = vpop.xlane.xlu0 %1043  ;;  %v1050_v45 = vpop.xlane.xlu1 %1049 }
 0xcc6   :  { %v1060_v0 = vmax.f32 %v1038_v58, %v1050_v45 }
 0xcc9   :  { %v1047_v51 = vpop.xlane.xlu0 %1046  ;;  %v1056_v62 = vpop.xlane.xlu1 %1055 }
 0xcca   :  { %v1062_v1 = vmax.f32 %v1044_v60, %v1056_v62 }
 0xccd   :  { %v1053_v61 = vpop.xlane.xlu0 %1052 }
 0xcce   :  { %v1061_v15 = vmax.f32 %v1041_v59, %v1053_v61 }
 0xcd0   :  { %v1064_v5 = vmax.f32 %v1060_v0, %v1061_v15 }
 0xcd1   :  { %v1059_v63 = vpop.xlane.xlu0 %1058 }
 0xcd2   :  { %v1063_v4 = vmax.f32 %v1047_v51, %v1059_v63 }
 0xcd4   :  { %v1065_v6 = vmax.f32 %v1062_v1, %v1063_v4 }
 0xcd6   :  { %v1066_v7 = vmax.f32 %v1064_v5, %v1065_v6 }
 0xcd8   :  { %v1067_v8 = vsub.f32 %v1038_v58, %v1066_v7  ;;  %v1068_v9 = vsub.f32 %v1041_v59, %v1066_v7  ;;  %v1069_v11 = vsub.f32 %v1044_v60, %v1066_v7  ;;  %v1070_v21 = vsub.f32 %v1047_v51, %v1066_v7 }
 0xcd9   :  { %v1071_v20 = vsub.f32 %v1050_v45, %v1066_v7  ;;  %v1072_v2 = vsub.f32 %v1053_v61, %v1066_v7  ;;  %v1073_v48 = vsub.f32 %v1056_v62, %v1066_v7  ;;  %v1074_v29 = vsub.f32 %v1059_v63, %v1066_v7 }
 0xcda   :  { %v1075_v18 = vmul.f32 1.442695, %v1067_v8  ;;  %v1077_v19 = vmul.f32 1.442695, %v1068_v9  ;;  %v1079_v25 = vmul.f32 1.442695, %v1069_v11 }
 0xcdb   :  { %v1081_v23 = vmul.f32 1.442695, %v1070_v21  ;;  %v1083_v28 = vmul.f32 1.442695, %v1071_v20  ;;  %v1085_v35 = vmul.f32 1.442695, %v1072_v2 }
 0xcdc   :  { %2267 = vpow2.f32 %v1075_v18  ;;  %v1087_v36 = vmul.f32 1.442695, %v1073_v48  ;;  %v1089_v24 = vmul.f32 1.442695, %v1074_v29  ;;  %v1147_v48 = vld [vmem:[%s3009_s2 + $0x70] sm:$0xff]  ;;  %v1336_v29 = vld [vmem:[%s3010_s3 + $0x88] sm:$0xff] }
 0xcdd   :  { %2269 = vpow2.f32 %v1077_v19 }
 0xcde   :  { %2271 = vpow2.f32 %v1079_v25 }
 0xcdf   :  { %2273 = vpow2.f32 %v1081_v23  ;;  %v1143_v23 = vld [vmem:[%s3009_s2 + $0x50] sm:$0xff] }
 0xce0   :  { %2275 = vpow2.f32 %v1083_v28  ;;  %v1335_v28 = vld [vmem:[%s3010_s3 + $0x80] sm:$0xff] }
 0xce1   :  { %2277 = vpow2.f32 %v1085_v35  ;;  %v2034_v35 = vpack.c.bf16 %v1147_v48, %v1143_v23  ;;  %v1351_v23 = vld [vmem:[%s3010_s3 + $0x100] sm:$0xff]  ;;  %v1352_v48 = vld [vmem:[%s3010_s3 + $0x108] sm:$0xff] }
 0xce2   :  { %2279 = vpow2.f32 %v1087_v36  ;;  %v2036_v36 = vpack.c.bf16 %v1336_v29, %v1335_v28  ;;  %v1164_v29 = vsub.s32 3, %v2459_v42 }
 0xce3   :  { %2281 = vpow2.f32 %v1089_v24  ;;  %v1319_v24 = vld [vmem:[%s3010_s3] sm:$0xff] }
 0xce6   :  { %v2268_v26 = vpop.eup %2267 }
 0xce7   :  { %v2270_v27 = vpop.eup %2269 }
 0xce8   :  { %v1091_v12 = vadd.f32 %v2270_v27, %v2268_v26  ;;  %v2272_v31 = vpop.eup %2271 }
 0xce9   :  { %v2274_v33 = vpop.eup %2273 }
 0xcea   :  { %v1092_v32 = vadd.f32 %v2272_v31, %v1091_v12  ;;  %v2276_v34 = vpop.eup %2275  ;;  %v1338_v12 = vld [vmem:[%s3010_s3 + $0x98] sm:$0xff] }
 0xceb   :  { %v2278_v38 = vpop.eup %2277 }
 0xcec   :  { %v1093_v13 = vadd.f32 %v2274_v33, %v1092_v32  ;;  %v2280_v41 = vpop.eup %2279 }
 0xced   :  { %v2282_v46 = vpop.eup %2281 }
 0xcee   :  { %v1094_v37 = vadd.f32 %v2276_v34, %v1093_v13  ;;  %v1322_v13 = vld [vmem:[%s3010_s3 + $0x18] sm:$0xff] }
 0xcf0   :  { %v1095_v39 = vadd.f32 %v2278_v38, %v1094_v37  ;;  %v1340_v37 = vld [vmem:[%s3010_s3 + $0xa8] sm:$0xff] }
 0xcf2   :  { %v1096_v44 = vadd.f32 %v2280_v41, %v1095_v39 }
 0xcf4   :  { %v1097_v47 = vadd.f32 %v2282_v46, %v1096_v44  ;;  %v1324_v44 = vld [vmem:[%s3010_s3 + $0x28] sm:$0xff] }
 0xcf6   :  { %2283 = vrcp.f32 %v1097_v47  ;;  %v1342_v47 = vld [vmem:[%s3010_s3 + $0xb8] sm:$0xff] }
 0xd00   :  { %v2284_v49 = vpop.eup %2283 }
 0xd01   :  { %v1099_v52 = vmul.f32 %v2284_v49, %v2268_v26  ;;  %v1100_v53 = vmul.f32 %v2284_v49, %v2270_v27  ;;  %v1101_v55 = vmul.f32 %v2284_v49, %v2272_v31  ;;  %v1102_v56 = vmul.f32 %v2284_v49, %v2274_v33  ;;  %v1320_v26 = vld [vmem:[%s3010_s3 + $0x8] sm:$0xff]  ;;  %v1337_v27 = vld [vmem:[%s3010_s3 + $0x90] sm:$0xff] }
 0xd02   :  { %v1103_v57 = vmul.f32 %v2284_v49, %v2276_v34  ;;  %v1104_v45 = vmul.f32 %v2284_v49, %v2278_v38  ;;  %v1105_v63 = vmul.f32 %v2284_v49, %v2280_v41  ;;  %v1106_v5 = vmul.f32 %v2284_v49, %v2282_v46  ;;  %v1321_v33 = vld [vmem:[%s3010_s3 + $0x10] sm:$0xff]  ;;  %v1339_v34 = vld [vmem:[%s3010_s3 + $0xa0] sm:$0xff] }
 0xd03   :  { %v1107_v58 = vmul.f32 %v1099_v52, %v2614_v14  ;;  %v1108_v59 = vmul.f32 %v1100_v53, %v2611_v10  ;;  %v1109_v60 = vmul.f32 %v1101_v55, %v2620_v17  ;;  %v1110_v51 = vmul.f32 %v1102_v56, %v2631_v54  ;;  %v1323_v41 = vld [vmem:[%s3010_s3 + $0x20] sm:$0xff]  ;;  %v1341_v46 = vld [vmem:[%s3010_s3 + $0xb0] sm:$0xff]  ;;  %v1326_v55 = vld [vmem:[%s3010_s3 + $0x38] sm:$0xff] }
 0xd04   :  { %v1111_v0 = vmul.f32 %v1103_v57, %v2617_v16  ;;  %v1112_v14 = vmul.f32 %v1104_v45, %v2638_v40  ;;  %v1113_v6 = vmul.f32 %v1105_v63, %v2625_v22  ;;  %v1114_v8 = vmul.f32 %v1106_v5, %v2643_v30  ;;  %v1135_v16 = vld [vmem:[%s3009_s2 + $0x10] sm:$0xff]  ;;  %v1144_v22 = vld [vmem:[%s3009_s2 + $0x58] sm:$0xff]  ;;  %v1343_v56 = vld [vmem:[%s3010_s3 + $0xc0] sm:$0xff] }
 0xd05   :  { %v1115_v61 = vsel %vm71_vm0, %v1107_v58, 0.0  ;;  %v1116_v62 = vsel %vm71_vm0, %v1108_v59, 0.0  ;;  %v1118_v1 = vsel %vm71_vm0, %v1109_v60, 0.0  ;;  %v1120_v10 = vsel %vm71_vm0, %v1110_v51, 0.0  ;;  %v1139_v40 = vld [vmem:[%s3009_s2 + $0x30] sm:$0xff]  ;;  %v1148_v30 = vld [vmem:[%s3009_s2 + $0x78] sm:$0xff] }
 0xd06   :  { %v1117_v15 = vadd.f32 %v1116_v62, %v1115_v61  ;;  %v1122_v54 = vsel %vm71_vm0, %v1111_v0, 0.0  ;;  %v1124_v9 = vsel %vm71_vm0, %v1112_v14, 0.0  ;;  %v1126_v21 = vsel %vm71_vm0, %v1113_v6, 0.0  ;;  %v1325_v53 = vld [vmem:[%s3010_s3 + $0x30] sm:$0xff]  ;;  %v1344_v57 = vld [vmem:[%s3010_s3 + $0xc8] sm:$0xff]  ;;  %v1327_v60 = vld [vmem:[%s3010_s3 + $0x40] sm:$0xff] }
 0xd07   :  { %v1128_v19 = vsel %vm71_vm0, %v1114_v8, 0.0  ;;  %v2030_v20 = vpack.c.bf16 %v1139_v40, %v1135_v16  ;;  %v2032_v2 = vpack.c.bf16 %v1148_v30, %v1144_v22  ;;  %v2038_v31 = vpack.c.bf16 %v1320_v26, %v1319_v24  ;;  %v1328_v45 = vld [vmem:[%s3010_s3 + $0x48] sm:$0xff]  ;;  %v1345_v51 = vld [vmem:[%s3010_s3 + $0xd0] sm:$0xff]  ;;  %v1346_v61 = vld [vmem:[%s3010_s3 + $0xd8] sm:$0xff] }
 0xd08   :  { %v1119_v4 = vadd.f32 %v1118_v1, %v1117_v15  ;;  %v2040_v32 = vpack.c.bf16 %v1338_v12, %v1337_v27  ;;  %v2042_v38 = vpack.c.bf16 %v1322_v13, %v1321_v33  ;;  %v2044_v39 = vpack.c.bf16 %v1340_v37, %v1339_v34  ;;  %v1329_v63 = vld [vmem:[%s3010_s3 + $0x50] sm:$0xff]  ;;  %v1330_v0 = vld [vmem:[%s3010_s3 + $0x58] sm:$0xff]  ;;  %v1347_v1 = vld [vmem:[%s3010_s3 + $0xe0] sm:$0xff] }
 0xd09   :  { %v2046_v49 = vpack.c.bf16 %v1324_v44, %v1323_v41  ;;  %v2048_v52 = vpack.c.bf16 %v1342_v47, %v1341_v46  ;;  %v2050_v58 = vpack.c.bf16 %v1326_v55, %v1325_v53  ;;  %v2052_v59 = vpack.c.bf16 %v1344_v57, %v1343_v56  ;;  %v1333_v8 = vld [vmem:[%s3010_s3 + $0x70] sm:$0xff]  ;;  %v1367_v40 = vld [vmem:[%s3010_s3 + $0x180] sm:$0xff]  ;;  %v1354_v12 = vld [vmem:[%s3010_s3 + $0x118] sm:$0xff] }
 0xd0a   :  { %v1121_v17 = vadd.f32 %v1120_v10, %v1119_v4  ;;  %v2054_v62 = vpack.c.bf16 %v1328_v45, %v1327_v60  ;;  %v2056_v15 = vpack.c.bf16 %v1346_v61, %v1345_v51  ;;  %v1348_v4 = vld [vmem:[%s3010_s3 + $0xe8] sm:$0xff]  ;;  %v2058_v5 = vpack.c.bf16 %v1330_v0, %v1329_v63  ;;  %v1331_v10 = vld [vmem:[%s3010_s3 + $0x60] sm:$0xff]  ;;  %v1353_v27 = vld [vmem:[%s3010_s3 + $0x110] sm:$0xff] }
 0xd0b   :  { %v2060_v14 = vpack.c.bf16 %v1348_v4, %v1347_v1  ;;  %v2820_v30 = vld [vmem:[%s3011_s6] sm:$0xf]  ;;  %v1372_v33 = vld [vmem:[%s3010_s3 + $0x1a8] sm:$0xff]  ;;  %v2074_v34 = vpack.c.bf16 %v1354_v12, %v1353_v27  ;;  %v1373_v46 = vld [vmem:[%s3010_s3 + $0x1b0] sm:$0xff] }
 0xd0c   :  { %v1123_v7 = vadd.f32 %v1122_v54, %v1121_v17  ;;  %v1332_v17 = vld [vmem:[%s3010_s3 + $0x68] sm:$0xff]  ;;  %v1349_v54 = vld [vmem:[%s3010_s3 + $0xf0] sm:$0xff]  ;;  %v1374_v47 = vld [vmem:[%s3010_s3 + $0x1b8] sm:$0xff] }
 0xd0d   :  { %v2062_v6 = vpack.c.bf16 %v1332_v17, %v1331_v10  ;;  %v1356_v41 = vld [vmem:[%s3010_s3 + $0x128] sm:$0xff]  ;;  %v2080_v53 = vpack.c.bf16 %v1374_v47, %v1373_v46  ;;  %v1357_v55 = vld [vmem:[%s3010_s3 + $0x130] sm:$0xff]  ;;  %v1358_v56 = vld [vmem:[%s3010_s3 + $0x138] sm:$0xff]  ;;  %v1160_v10 = vsub.s32 2, %v2459_v42 }
 0xd0e   :  { %v1125_v11 = vadd.f32 %v1124_v9, %v1123_v7  ;;  %v1350_v7 = vld [vmem:[%s3010_s3 + $0xf8] sm:$0xff]  ;;  %v1375_v57 = vld [vmem:[%s3010_s3 + $0x1c0] sm:$0xff]  ;;  %v1360_v51 = vld [vmem:[%s3010_s3 + $0x148] sm:$0xff] }
 0xd0f   :  { %v2064_v9 = vpack.c.bf16 %v1350_v7, %v1349_v54  ;;  %v1359_v45 = vld [vmem:[%s3010_s3 + $0x140] sm:$0xff]  ;;  %v1377_v61 = vld [vmem:[%s3010_s3 + $0x1d0] sm:$0xff]  ;;  %v1362_v1 = vld [vmem:[%s3010_s3 + $0x158] sm:$0xff] }
 0xd10   :  { %v1127_v18 = vadd.f32 %v1126_v21, %v1125_v11  ;;  %v1334_v11 = vld [vmem:[%s3010_s3 + $0x78] sm:$0xff]  ;;  %v1368_v21 = vld [vmem:[%s3010_s3 + $0x188] sm:$0xff]  ;;  %v1361_v0 = vld [vmem:[%s3010_s3 + $0x150] sm:$0xff] }
 0xd11   :  { %v2066_v16 = vpack.c.bf16 %v1334_v11, %v1333_v8  ;;  %v2068_v22 = vpack.c.bf16 %v1368_v21, %v1367_v40  ;;  %v1379_v4 = vld [vmem:[%s3010_s3 + $0x1e0] sm:$0xff]  ;;  %v1364_v54 = vld [vmem:[%s3010_s3 + $0x168] sm:$0xff]  ;;  %v1381_v7 = vld [vmem:[%s3010_s3 + $0x1f0] sm:$0xff] }
 0xd12   :  { %v1129_v25 = vadd.f32 %v1128_v19, %v1127_v18  ;;  %v1153_v18 = vrot.slane %v2820_v30, %v63_v43  ;;  %v1157_v19 = vrot.slane %v2820_v30, %v67_v50  ;;  %v1369_v43 = vld [vmem:[%s3010_s3 + $0x190] sm:$0xff]  ;;  %v1370_v50 = vld [vmem:[%s3010_s3 + $0x198] sm:$0xff] }
 0xd13   :  { %v2072_v26 = vpack.c.bf16 %v1370_v50, %v1369_v43  ;;  %v1382_v8 = vld [vmem:[%s3010_s3 + $0x1f8] sm:$0xff]  ;;  %v1536_v50 = vld [vmem:[%s3012_s4 + $0x30] sm:$0xff] }
 0xd14   :  { %1741 = vmatmul.mubr.msk.f32.vlgmr.msra.gmra.mrb[8].mxu1 %vm71_vm0, %v1129_v25  ;;  %v2096_v11 = vpack.c.bf16 %v1382_v8, %v1381_v7  ;;  %v1366_v40 = vld [vmem:[%s3010_s3 + $0x178] sm:$0xff]  ;;  %v1540_v12 = vld [vmem:[%s3012_s4 + $0x50] sm:$0xff] }
 0xd15   :  { %2031 = vmatpush1.bf16.msra.mxu1 %v2030_v20  ;;  %1308 = vmatprep.mubr.f32.mxu1 %v2285_v3 }
 0xd16   :  { %2033 = vmatprep.subr.bf16.mxu1 %v2032_v2 }
 0xd19   :  { %2035 = vmatpush1.bf16.msra.mxu1 %v2034_v35 }
 0xd1a   :  { %2037 = vmatprep.subr.bf16.mxu1 %v2036_v36  ;;  %v2070_v36 = vpack.c.bf16 %v1352_v48, %v1351_v23  ;;  %v1533_v23 = vld [vmem:[%s3012_s4 + $0x18] sm:$0xff] }
 0xd1c   :  { %1742 = vmatmul.mubr.msk.f32.vlgmr.msra.gmra.mrb[10].mxu1 %vm71_vm0, %v1129_v25 }
 0xd1d   :  { %2039 = vmatpush3.bf16.msra.mxu1 %v2038_v31  ;;  %v1165_v31 = vrot.slane %v2820_v30, %v1164_v29  ;;  %v1535_v29 = vld [vmem:[%s3012_s4 + $0x28] sm:$0xff] }
 0xd1e   :  { %2041 = vmatprep.subr.bf16.mxu1 %v2040_v32  ;;  %v1371_v32 = vld [vmem:[%s3010_s3 + $0x1a0] sm:$0xff] }
 0xd21   :  { %2043 = vmatpush3.bf16.msra.mxu1 %v2042_v38  ;;  %v2076_v38 = vpack.c.bf16 %v1372_v33, %v1371_v32  ;;  %v1542_v33 = vld [vmem:[%s3012_s4 + $0x60] sm:$0xff] }
 0xd22   :  { %2045 = vmatprep.subr.bf16.mxu1 %v2044_v39  ;;  %v1355_v39 = vld [vmem:[%s3010_s3 + $0x120] sm:$0xff] }
 0xd25   :  { %2047 = vmatpush3.bf16.msra.mxu1 %v2046_v49 }
 0xd26   :  { %2049 = vmatprep.subr.bf16.mxu1 %v2048_v52  ;;  %v2078_v52 = vpack.c.bf16 %v1356_v41, %v1355_v39  ;;  %v1744_v41 = vld [vmem:[%s3011_s6 + $0x5] ss:$0 sm:$0xff] }
 0xd27   :  { %1627 = vrot.lane.b32.xlu1 %v1744_v41, %s2287_s21 }
 0xd29   :  { %2051 = vmatpush3.bf16.msra.mxu1 %v2050_v58  ;;  %v1376_v58 = vld [vmem:[%s3010_s3 + $0x1c8] sm:$0xff] }
 0xd2a   :  { %2053 = vmatprep.subr.bf16.mxu1 %v2052_v59  ;;  %v2082_v59 = vpack.c.bf16 %v1358_v56, %v1357_v55  ;;  %v2084_v60 = vpack.c.bf16 %v1376_v58, %v1375_v57  ;;  %v1623_v57 = vld [vmem:[%s3013_s5] sm:$0xff]  ;;  %v1624_v58 = vld [vmem:[%s3013_s5 + $0x8] sm:$0xff] }
 0xd2d   :  { %2055 = vmatpush3.bf16.msra.mxu1 %v2054_v62  ;;  %v1378_v62 = vld [vmem:[%s3010_s3 + $0x1d8] sm:$0xff] }
 0xd2e   :  { %2057 = vmatprep.subr.bf16.mxu1 %v2056_v15  ;;  %v2086_v15 = vpack.c.bf16 %v1360_v51, %v1359_v45  ;;  %v2088_v63 = vpack.c.bf16 %v1378_v62, %v1377_v61  ;;  %v1625_v51 = vld [vmem:[%s3013_s5 + $0x10] sm:$0xff]  ;;  %v1626_v61 = vld [vmem:[%s3013_s5 + $0x18] sm:$0xff] }
 0xd2f   :  { %v2128_v62 = vpack.c.bf16 %v1626_v61, %v1625_v51 }
 0xd31   :  { %2059 = vmatpush3.bf16.msra.mxu1 %v2058_v5  ;;  %v1380_v5 = vld [vmem:[%s3010_s3 + $0x1e8] sm:$0xff] }
 0xd32   :  { %2061 = vmatprep.subr.bf16.mxu1 %v2060_v14  ;;  %v2090_v14 = vpack.c.bf16 %v1362_v1, %v1361_v0  ;;  %v2092_v17 = vpack.c.bf16 %v1380_v5, %v1379_v4 }
 0xd35   :  { %2063 = vmatpush3.bf16.msra.mxu1 %v2062_v6  ;;  %v1363_v6 = vld [vmem:[%s3010_s3 + $0x160] sm:$0xff] }
 0xd36   :  { %2065 = vmatprep.subr.bf16.mxu1 %v2064_v9  ;;  %v2094_v42 = vpack.c.bf16 %v1364_v54, %v1363_v6  ;;  %v1161_v9 = vrot.slane %v2820_v30, %v1160_v10  ;;  %v1530_v30 = vld [vmem:[%s3012_s4] sm:$0xff] }
 0xd39   :  { %2067 = vmatpush3.bf16.msra.mxu1 %v2066_v16  ;;  %v1365_v16 = vld [vmem:[%s3010_s3 + $0x170] sm:$0xff] }
 0xd3a   :  { %2069 = vmatprep.subr.bf16.mxu1 %v2068_v22  ;;  %v2098_v21 = vpack.c.bf16 %v1366_v40, %v1365_v16 }
 0xd99   :  { %v1628_v4 = vpop.permute.xlu1 %1627 }
 0xde7   :  { %v1239_v20 = vpop.f32.mrb[8].mxu1 }
 0xde8   :  { %v1240_v25 = vadd.f32 %v1239_v20, %v1153_v18  ;;  %v1241_v2 = vpop.f32.mrb[9].mxu1  ;;  %v1531_v20 = vld [vmem:[%s3012_s4 + $0x8] sm:$0xff] }
 0xde9   :  { %v1242_v28 = vadd.f32 %v1241_v2, %v1157_v19  ;;  %v2288_v19 = vmov 0.0|0.0   ;;  %v2101_v2 = vpack.c.bf16 %v1531_v20, %v1530_v30 }
 0xdea   :  { %v1315_v24 = vmax.f32 %v1240_v25, 0.0  ;;  %v1532_v25 = vld [vmem:[%s3012_s4 + $0x10] sm:$0xff] }
 0xdeb   :  { %v1316_v35 = vmax.f32 %v1242_v28, 0.0  ;;  %v2104_v48 = vpack.c.bf16 %v1533_v23, %v1532_v25  ;;  %v1534_v28 = vld [vmem:[%s3012_s4 + $0x20] sm:$0xff] }
 0xdec   :  { %v2107_v43 = vpack.c.bf16 %v1535_v29, %v1534_v28 }
 0xded   :  { %1453 = vmatprep.mubr.f32.mxu1 %v1316_v35  ;;  %v1537_v35 = vld [vmem:[%s3012_s4 + $0x38] sm:$0xff] }
 0xdee   :  { %1454 = vmatmul.mubr.f32.vlgmr.msra.gmra.mrb[12].mxu1 %v1315_v24  ;;  %v1538_v24 = vld [vmem:[%s3012_s4 + $0x40] sm:$0xff] }
 0xdef   :  { %v1310_v13 = vpop.f32.mrb[10].mxu1  ;;  %2071 = vmatpush3.bf16.msra.mxu1 %v2070_v36  ;;  %v2110_v36 = vpack.c.bf16 %v1537_v35, %v1536_v50 }
 0xdf0   :  { %v1312_v37 = vpop.f32.mrb[11].mxu1  ;;  %2073 = vmatprep.subr.bf16.mxu1 %v2072_v26  ;;  %v1311_v22 = vadd.f32 %v1310_v13, %v1161_v9  ;;  %v1539_v26 = vld [vmem:[%s3012_s4 + $0x48] sm:$0xff] }
 0xdf1   :  { %v1313_v44 = vadd.f32 %v1312_v37, %v1165_v31  ;;  %v2113_v27 = vpack.c.bf16 %v1539_v26, %v1538_v24  ;;  %v1541_v31 = vld [vmem:[%s3012_s4 + $0x58] sm:$0xff]  ;;  %v1543_v13 = vld [vmem:[%s3012_s4 + $0x68] sm:$0xff]  ;;  %v1544_v37 = vld [vmem:[%s3012_s4 + $0x70] sm:$0xff] }
 0xdf2   :  { %v1317_v18 = vmax.f32 %v1311_v22, 0.0  ;;  %v2116_v32 = vpack.c.bf16 %v1541_v31, %v1540_v12 }
 0xdf3   :  { %v1318_v49 = vmax.f32 %v1313_v44, 0.0  ;;  %2075 = vmatpush3.bf16.msra.mxu1 %v2074_v34  ;;  %v2119_v34 = vpack.c.bf16 %v1543_v13, %v1542_v33 }
 0xdf4   :  { %2077 = vmatprep.subr.bf16.mxu1 %v2076_v38  ;;  %v1545_v38 = vld [vmem:[%s3012_s4 + $0x78] sm:$0xff] }
 0xdf5   :  { %1523 = vmatprep.mubr.f32.mxu1 %v1318_v49  ;;  %v2122_v39 = vpack.c.bf16 %v1545_v38, %v1544_v37  ;;  %v1743_v49 = vld [vmem:[%s3011_s6 + $0x4] ss:$0 sm:$0xff] }
 0xdf7   :  { %2079 = vmatpush3.bf16.msra.mxu1 %v2078_v52 }
 0xdf8   :  { %2081 = vmatprep.subr.bf16.mxu1 %v2080_v53 }
 0xdfb   :  { %2083 = vmatpush3.bf16.msra.mxu1 %v2082_v59 }
 0xdfc   :  { %2085 = vmatprep.subr.bf16.mxu1 %v2084_v60  ;;  %v2125_v60 = vpack.c.bf16 %v1624_v58, %v1623_v57 }
 0xdff   :  { %2087 = vmatpush3.bf16.msra.mxu1 %v2086_v15 }
 0xe00   :  { %2089 = vmatprep.subr.bf16.mxu1 %v2088_v63 }
 0xe03   :  { %2091 = vmatpush3.bf16.msra.mxu1 %v2090_v14 }
 0xe04   :  { %2093 = vmatprep.subr.bf16.mxu1 %v2092_v17 }
 0xe07   :  { %2095 = vmatpush3.bf16.msra.mxu1 %v2094_v42 }
 0xe08   :  { %2097 = vmatprep.subr.bf16.mxu1 %v2096_v11 }
 0xe0b   :  { %2099 = vmatpush3.bf16.msra.mxu1 %v2098_v21 }
 0xe0c   :  { %2100 = vmatprep.subr.bf16.mxu1 %v2288_v19 }
 0xe0e   :  { %1524 = vmatmul.mubr.f32.vlgmr.msra.gmra.mrb[14].mxu1 %v1317_v18 }
 0xe0f   :  { %2102 = vmatpush3.bf16.msra.mxu1 %v2101_v2  ;;  %1870 = vmatprep.mubr.msk.f32.mxu1 %vm2289_vm2, %v2285_v3 }
 0xe10   :  { %2103 = vmatprep.subr.bf16.mxu1 %v2288_v19 }
 0xe13   :  { %2105 = vmatpush3.bf16.msra.mxu1 %v2104_v48 }
 0xe14   :  { %2106 = vmatprep.subr.bf16.mxu1 %v2288_v19 }
 0xe17   :  { %2108 = vmatpush3.bf16.msra.mxu1 %v2107_v43 }
 0xe18   :  { %2109 = vmatprep.subr.bf16.mxu1 %v2288_v19 }
 0xe1b   :  { %2111 = vmatpush3.bf16.msra.mxu1 %v2110_v36 }
 0xe1c   :  { %2112 = vmatprep.subr.bf16.mxu1 %v2288_v19 }
 0xe1f   :  { %2114 = vmatpush3.bf16.msra.mxu1 %v2113_v27 }
 0xe20   :  { %2115 = vmatprep.subr.bf16.mxu1 %v2288_v19 }
 0xe23   :  { %2117 = vmatpush3.bf16.msra.mxu1 %v2116_v32 }
 0xe24   :  { %2118 = vmatprep.subr.bf16.mxu1 %v2288_v19 }
 0xe27   :  { %2120 = vmatpush3.bf16.msra.mxu1 %v2119_v34 }
 0xe28   :  { %2121 = vmatprep.subr.bf16.mxu1 %v2288_v19 }
 0xe2b   :  { %2123 = vmatpush3.bf16.msra.mxu1 %v2122_v39 }
 0xe2c   :  { %2124 = vmatprep.subr.bf16.mxu1 %v2288_v19 }
 0xec1   :  { %v1778_v44 = vpop.f32.mrb[12].mxu1 }
 0xec2   :  { %v1779_v46 = vpop.f32.mrb[13].mxu1 }
 0xec3   :  { %v1780_v47 = vadd.f32 %v1779_v46, %v1778_v44 }
 0xec5   :  { %v1456_v55 = vadd.f32 %v1780_v47, %v1743_v49 }
 0xee1   :  { %v1813_v52 = vpop.f32.mrb[14].mxu1 }
 0xee2   :  { %v1814_v53 = vpop.f32.mrb[15].mxu1 }
 0xee3   :  { %v1815_v56 = vadd.f32 %v1814_v53, %v1813_v52 }
 0xee5   :  { %v1526_v59 = vadd.f32 %v1815_v56, %v1456_v55 }
 0xee7   :  { %v1529_v45 = vmax.f32 %v1526_v59, 0.0 }
 0xee9   :  { %1871 = vmatmul.mubr.f32.vlgmr.msra.gmra.mrb[16].mxu1 %v1529_v45 }
 0xeea   :  { %2126 = vmatpush3.bf16.msra.mxu1 %v2125_v60  ;;  %1881 = vmatprep.mubr.msk.f32.mxu1 %vm2289_vm2, %v2285_v3 }
 0xeeb   :  { %2127 = vmatprep.subr.bf16.mxu1 %v2288_v19 }
 0xeee   :  { %2129 = vmatpush3.bf16.msra.mxu1 %v2128_v62 }
 0xfbc   :  { %v1618_v15 = vpop.f32.mrb[16].mxu1 }
 0xfbd   :  { %v1619_v63 = vadd.f32 %v1744_v41, %v1618_v15  ;;  %v1872_v0 = vpop.f32.mrb[17].mxu1 }
 0xfbf   :  { %v1622_v1 = vmax.f32 %v1619_v63, 0.0 }
 0xfc1   :  { %1882 = vmatmul.mubr.msk.f32.vlgmr.msra.gmra.mrb[18].mxu1 %vm71_vm0, %v1622_v1 }
0x1094   :  { %v1699_v3 = vpop.f32.mrb[18].mxu1 }
0x1095   :  { %v1700_v5 = vadd.f32 %v1699_v3, %v1628_v4  ;;  %v1883_v14 = vpop.f32.mrb[19].mxu1 }
0x1097   :  { %1704 = vst.msk [vmem:[%s3014_s7] sm:$0xff] %vm1703_vm3, %v1700_v5 }

</bundles_post_ra>
